<compile_context>
chip_gen: v7x
topology: tpu7x:2x2x1
jax: 0.10.0
libtpu: 0.0.40
codegen_flags: <defaults>
</compile_context>

<pallas_src>
import functools

import jax
import jax.numpy as jnp
from jax import lax
from jax.experimental import pallas as pl
from jax.experimental.pallas import tpu as pltpu

DIM_PAD = 128   # lane-dense feature width inside the kernel


# -----------------------------------------------------------------------------
# In-kernel math helpers
# -----------------------------------------------------------------------------
def _silu(x):
    return x * jax.nn.sigmoid(x)


def _layernorm_padded(x, g, b, valid, total, eps=1e-5):
    """LayerNorm over the first `valid` lanes of a (R, total) tensor whose padded
    lanes [valid:total] are exactly zero. gamma/beta are zero on padded lanes so the
    output stays zero there."""
    inv = 1.0 / valid
    mu = jnp.sum(x, axis=-1, keepdims=True) * inv
    d = x - mu
    # Padded lanes contribute (0 - mu)^2 = mu^2 each to sum(d*d); subtract exactly.
    var = (jnp.sum(d * d, axis=-1, keepdims=True) - (total - valid) * mu * mu) * inv
    return d * lax.rsqrt(var + eps) * g + b


def _mgn_conv(x, e, src_oh, dst_oh, w_ref, b_ref, valid, total):
    """One MeshGraphNetsConv. All matmuls run bf16 x bf16 -> f32 on the MXU."""
    f32, bf16 = jnp.float32, jnp.bfloat16
    # Stacked weights (bf16):   0 ewi, 1 ewj, 2 ewe, 3 ew2, 4 nwx, 5 nwa, 6 nw2
    ewi, ewj, ewe, ew2 = w_ref[0, 0], w_ref[0, 1], w_ref[0, 2], w_ref[0, 3]
    nwx, nwa, nw2 = w_ref[0, 4], w_ref[0, 5], w_ref[0, 6]
    # Stacked biases / LN (f32): 0 eb1, 1 eb2, 2 eg, 3 ebt, 4 nb1, 5 nb2, 6 ng, 7 nbt
    eb1, eb2, eg, ebt = b_ref[0, 0], b_ref[0, 1], b_ref[0, 2], b_ref[0, 3]
    nb1, nb2, ng, nbt = b_ref[0, 4], b_ref[0, 5], b_ref[0, 6], b_ref[0, 7]

    xb = x.astype(bf16)
    edge_b = e.astype(bf16)

    # Transform on the node axis first, then gather per edge via one-hot matmuls:
    #   x_i @ Wi == dst_oh @ (x @ Wi)   (one-hot row-select is exact in bf16)
    ti = jnp.dot(xb, ewi, preferred_element_type=f32).astype(bf16)   # (N, D)
    tj = jnp.dot(xb, ewj, preferred_element_type=f32).astype(bf16)   # (N, D)

    # Edge MLP on concat([x_i, x_j, e]) -- concat folded into split matmuls.
    h = (jnp.dot(dst_oh, ti, preferred_element_type=f32)             # x_i @ Wi, (E, D)
         + jnp.dot(src_oh, tj, preferred_element_type=f32)           # x_j @ Wj, (E, D)
         + jnp.dot(edge_b, ewe, preferred_element_type=f32)
         + eb1)
    h = _silu(h)
    h = jnp.dot(h.astype(bf16), ew2, preferred_element_type=f32) + eb2
    h = _layernorm_padded(h, eg, ebt, valid, total)
    e_new = e + h                                                     # residual edge update

    # Scatter-add e_new onto target nodes: contract the edge axis of dst_oh (E, N)
    # with e_new (E, D) via a transposed-LHS matmul -> no separate (N, E) operand.
    aggr = lax.dot_general(dst_oh, e_new.astype(bf16),
                           dimension_numbers=(((0,), (0,)), ((), ())),
                           preferred_element_type=f32)                # (N, D), f32 acc

    # Node MLP on concat([x, aggr]).
    hn = (jnp.dot(xb, nwx, preferred_element_type=f32)
          + jnp.dot(aggr.astype(bf16), nwa, preferred_element_type=f32)
          + nb1)
    hn = _silu(hn)
    hn = jnp.dot(hn.astype(bf16), nw2, preferred_element_type=f32) + nb2
    hn = _layernorm_padded(hn, ng, nbt, valid, total)
    return x + hn, e_new                                              # residual node update


# -----------------------------------------------------------------------------
# Fused Processor kernel: grid axis = layer index; activations resident in VMEM
# -----------------------------------------------------------------------------
def processor_kernel(atm_in, bnd_in, ang_in,
                     src_a, dst_a, src_b, dst_b,
                     w_ba, b_ba, w_ab, b_ab,
                     atm_out, bnd_out, ang_out,
                     *, valid_dim, pad_dim):
    l = pl.program_id(0)

    # Layer 0: load initial features into the resident output blocks (accumulators).
    @pl.when(l == 0)
    def _():
        atm_out[...] = atm_in[...]
        bnd_out[...] = bnd_in[...]
        ang_out[...] = ang_in[...]

    # bnd_ang conv: nodes = bonds, edges = angles.
    bnd_x, ang_e = _mgn_conv(bnd_out[...], ang_out[...], src_a[...], dst_a[...],
                             w_ba, b_ba, valid_dim, pad_dim)
    # atm_bnd conv: nodes = atoms, edges = bonds (uses the just-updated h_bnd).
    atm_x, bnd_e = _mgn_conv(atm_out[...], bnd_x, src_b[...], dst_b[...],
                             w_ab, b_ab, valid_dim, pad_dim)

    ang_out[...] = ang_e
    bnd_out[...] = bnd_e
    atm_out[...] = atm_x


# -----------------------------------------------------------------------------
# Host-side wrapper: padding, bf16 weight stacking, BlockSpecs
# -----------------------------------------------------------------------------
def _const_spec(shape):
    zeros = (0,) * len(shape)
    return pl.BlockSpec(shape, lambda l, _z=zeros: _z)


def _layer_spec(shape):
    block = (1,) + tuple(shape[1:])
    zeros = (0,) * (len(shape) - 1)
    return pl.BlockSpec(block, lambda l, _z=zeros: (l,) + _z)


def _pad_lanes(a, pad_dim):
    return jnp.pad(a, ((0, 0), (0, pad_dim - a.shape[1])))


def _stack_conv_params(param_list, dim, pad_dim):
    """Stack per-layer conv params into (L,7,P,P) bf16 weights and (L,8,1,P) f32 biases.
    Zero-padding (incl. gamma/beta) keeps padded lanes exactly zero inside the kernel."""
    def padw(w):
        return jnp.pad(w, ((0, pad_dim - dim), (0, pad_dim - dim)))

    def padb(v):
        return jnp.pad(v, ((0, 0), (0, pad_dim - dim)))

    Ws, Bs = [], []
    for (ewi, ewj, ewe, eb1, ew2, eb2, eg, ebt,
         nwx, nwa, nb1, nw2, nb2, ng, nbt) in param_list:
        Ws.append(jnp.stack([padw(ewi), padw(ewj), padw(ewe), padw(ew2),
                             padw(nwx), padw(nwa), padw(nw2)], axis=0))
        Bs.append(jnp.stack([padb(eb1), padb(eb2), padb(eg), padb(ebt),
                             padb(nb1), padb(nb2), padb(ng), padb(nbt)], axis=0))
    W = jnp.stack(Ws, axis=0).astype(jnp.bfloat16)   # (L, 7, P, P)
    B = jnp.stack(Bs, axis=0)[:, :, None, :].reshape(len(param_list), 8, 1, pad_dim)
    return W, B.astype(jnp.float32)


@jax.jit
def processor_forward(params, h_atm, h_bnd, h_ang, edge_index_bnd, edge_index_ang):
    dim = h_atm.shape[1]
    pad = DIM_PAD
    L = len(params["bnd_ang"])
    n_atm, n_bnd = h_atm.shape[0], h_bnd.shape[0]

    atm_p = _pad_lanes(h_atm.astype(jnp.float32), pad)
    bnd_p = _pad_lanes(h_bnd.astype(jnp.float32), pad)
    ang_p = _pad_lanes(h_ang.astype(jnp.float32), pad)

    # Graph glue as bf16 one-hot operators (entries 0/1 -> exact in bf16).
    # TODO(synk): at realistic mesh sizes replace the dense one-hot gather/scatter with
    # scalar-prefetch (PrefetchScalarGridSpec) row gathers + a sorted, pl.when-gated
    # segment scatter-add, and tile the edge dim to respect v7x's 64 MiB VMEM.
    src_a = jax.nn.one_hot(edge_index_ang[0], n_bnd, dtype=jnp.bfloat16)  # (E_ang, N_bnd)
    dst_a = jax.nn.one_hot(edge_index_ang[1], n_bnd, dtype=jnp.bfloat16)
    src_b = jax.nn.one_hot(edge_index_bnd[0], n_atm, dtype=jnp.bfloat16)  # (E_bnd, N_atm)
    dst_b = jax.nn.one_hot(edge_index_bnd[1], n_atm, dtype=jnp.bfloat16)

    w_ba, b_ba = _stack_conv_params(params["bnd_ang"], dim, pad)
    w_ab, b_ab = _stack_conv_params(params["atm_bnd"], dim, pad)

    kernel = functools.partial(processor_kernel, valid_dim=dim, pad_dim=pad)

    operands = (atm_p, bnd_p, ang_p, src_a, dst_a, src_b, dst_b,
                w_ba, b_ba, w_ab, b_ab)
    in_specs = [
        _const_spec(atm_p.shape), _const_spec(bnd_p.shape), _const_spec(ang_p.shape),
        _const_spec(src_a.shape), _const_spec(dst_a.shape),
        _const_spec(src_b.shape), _const_spec(dst_b.shape),
        _layer_spec(w_ba.shape), _layer_spec(b_ba.shape),
        _layer_spec(w_ab.shape), _layer_spec(b_ab.shape),
    ]
    out_specs = (_const_spec(atm_p.shape), _const_spec(bnd_p.shape),
                 _const_spec(ang_p.shape))
    out_shape = (jax.ShapeDtypeStruct(atm_p.shape, jnp.float32),
                 jax.ShapeDtypeStruct(bnd_p.shape, jnp.float32),
                 jax.ShapeDtypeStruct(ang_p.shape, jnp.float32))

    out_atm, out_bnd, out_ang = pl.pallas_call(
        kernel,
        grid=(L,),
        in_specs=in_specs,
        out_specs=out_specs,
        out_shape=out_shape,
        compiler_params=pltpu.CompilerParams(
            dimension_semantics=("arbitrary",),   # layers carry state sequentially
        ),
    )(*operands)

    # Drop the padded lanes to return the module's (N, dim) features.
    return out_atm[:, :dim], out_bnd[:, :dim], out_ang[:, :dim]


# -----------------------------------------------------------------------------
# Deterministic parameter init (synthetic weights; no checkpoint load).
# -----------------------------------------------------------------------------
def init_conv_params(key, dim):
    ks = jax.random.split(key, 7)
    s = 0.1
    f32 = jnp.float32
    ewi = jax.random.normal(ks[0], (dim, dim), f32) * s
    ewj = jax.random.normal(ks[1], (dim, dim), f32) * s
    ewe = jax.random.normal(ks[2], (dim, dim), f32) * s
    eb1 = jnp.zeros((1, dim), f32)
    ew2 = jax.random.normal(ks[3], (dim, dim), f32) * s
    eb2 = jnp.zeros((1, dim), f32)
    eg = jnp.ones((1, dim), f32)
    ebt = jnp.zeros((1, dim), f32)
    nwx = jax.random.normal(ks[4], (dim, dim), f32) * s
    nwa = jax.random.normal(ks[5], (dim, dim), f32) * s
    nb1 = jnp.zeros((1, dim), f32)
    nw2 = jax.random.normal(ks[6], (dim, dim), f32) * s
    nb2 = jnp.zeros((1, dim), f32)
    ng = jnp.ones((1, dim), f32)
    nbt = jnp.zeros((1, dim), f32)
    return (ewi, ewj, ewe, eb1, ew2, eb2, eg, ebt,
            nwx, nwa, nb1, nw2, nb2, ng, nbt)


def init_processor_params(key, num_convs, dim):
    keys = jax.random.split(key, 2 * num_convs)
    return {
        "bnd_ang": [init_conv_params(keys[i], dim) for i in range(num_convs)],
        "atm_bnd": [init_conv_params(keys[num_convs + i], dim) for i in range(num_convs)],
    }


# -----------------------------------------------------------------------------
# Pure-JAX reference (gather via indexing, scatter via segment_sum), f32 / unpadded.
# -----------------------------------------------------------------------------
def _layernorm_ref(x, g, b, eps=1e-5):
    mu = jnp.mean(x, axis=-1, keepdims=True)
    var = jnp.mean(jnp.square(x - mu), axis=-1, keepdims=True)
    return (x - mu) * lax.rsqrt(var + eps) * g + b


def mgn_conv_ref(x, e, edge_index, p):
    (ewi, ewj, ewe, eb1, ew2, eb2, eg, ebt,
     nwx, nwa, nb1, nw2, nb2, ng, nbt) = p
    src, dst = edge_index[0], edge_index[1]
    x_j = x[src]
    x_i = x[dst]
    h = x_i @ ewi + x_j @ ewj + e @ ewe + eb1
    h = _silu(h)
    h = h @ ew2 + eb2
    h = _layernorm_ref(h, eg, ebt)
    e_new = e + h
    aggr = jax.ops.segment_sum(e_new, dst, num_segments=x.shape[0])
    hn = x @ nwx + aggr @ nwa + nb1
    hn = _silu(hn)
    hn = hn @ nw2 + nb2
    hn = _layernorm_ref(hn, ng, nbt)
    return x + hn, e_new


def processor_ref(params, h_atm, h_bnd, h_ang, edge_index_bnd, edge_index_ang):
    for bnd_ang_p, atm_bnd_p in zip(params["bnd_ang"], params["atm_bnd"]):
        h_bnd, h_ang = mgn_conv_ref(h_bnd, h_ang, edge_index_ang, bnd_ang_p)
        h_atm, h_bnd = mgn_conv_ref(h_atm, h_bnd, edge_index_bnd, atm_bnd_p)
    return h_atm, h_bnd, h_ang


# -----------------------------------------------------------------------------
if __name__ == "__main__":
    num_convs = 2
    dim = 32
    n_atm, n_bnd, n_ang = 16, 32, 48   # atoms; bonds (edges of atom graph / nodes of
                                       # line graph); angles (edges of line graph)

    key = jax.random.PRNGKey(0)
    k0, k1, k2, k3, k4, k5 = jax.random.split(key, 6)

    h_atm = jax.random.normal(k0, (n_atm, dim), jnp.float32)
    h_bnd = jax.random.normal(k1, (n_bnd, dim), jnp.float32)
    h_ang = jax.random.normal(k2, (n_ang, dim), jnp.float32)
    edge_index_bnd = jax.random.randint(k3, (2, n_bnd), 0, n_atm, dtype=jnp.int32)
    edge_index_ang = jax.random.randint(k4, (2, n_ang), 0, n_bnd, dtype=jnp.int32)

    params = init_processor_params(k5, num_convs, dim)

    out_atm, out_bnd, out_ang = processor_forward(
        params, h_atm, h_bnd, h_ang, edge_index_bnd, edge_index_ang)
    jax.block_until_ready((out_atm, out_bnd, out_ang))

    # Sanity check against a pure-JAX reference.
    ref_atm, ref_bnd, ref_ang = processor_ref(
        params, h_atm, h_bnd, h_ang, edge_index_bnd, edge_index_ang)
    assert out_atm.shape == (n_atm, dim) and out_bnd.shape == (n_bnd, dim) \
        and out_ang.shape == (n_ang, dim)
    assert jnp.allclose(out_atm, ref_atm, rtol=5e-2, atol=5e-2)
    assert jnp.allclose(out_bnd, ref_bnd, rtol=5e-2, atol=5e-2)
    assert jnp.allclose(out_ang, ref_ang, rtol=5e-2, atol=5e-2)

    print("KERNEL_OK")
</pallas_src>

<mosaic_0001>
module attributes {stable_mosaic.version = 11 : i64} {
  func.func @processor_kernel(%arg0: i32, %arg1: memref<16x128xf32, #tpu.memory_space<vmem>>, %arg2: memref<32x128xf32, #tpu.memory_space<vmem>>, %arg3: memref<48x128xf32, #tpu.memory_space<vmem>>, %arg4: memref<48x32xbf16, #tpu.memory_space<vmem>>, %arg5: memref<48x32xbf16, #tpu.memory_space<vmem>>, %arg6: memref<32x16xbf16, #tpu.memory_space<vmem>>, %arg7: memref<32x16xbf16, #tpu.memory_space<vmem>>, %arg8: memref<1x7x128x128xbf16, #tpu.memory_space<vmem>>, %arg9: memref<1x8x1x128xf32, #tpu.memory_space<vmem>>, %arg10: memref<1x7x128x128xbf16, #tpu.memory_space<vmem>>, %arg11: memref<1x8x1x128xf32, #tpu.memory_space<vmem>>, %arg12: memref<16x128xf32, #tpu.memory_space<vmem>>, %arg13: memref<32x128xf32, #tpu.memory_space<vmem>>, %arg14: memref<48x128xf32, #tpu.memory_space<vmem>>) attributes {dimension_semantics = [#tpu.dimension_semantics<arbitrary>], iteration_bounds = array<i64: 2>, scalar_prefetch = 0 : i64, scratch_operands = 0 : i64, tpu.core_type = #tpu.core_type<tc>, window_params = [{pipeline_mode = #tpu.pipeline_mode<synchronous>, transform_indices = @transform_0, window_bounds = array<i64: 16, 128>}, {pipeline_mode = #tpu.pipeline_mode<synchronous>, transform_indices = @transform_1, window_bounds = array<i64: 32, 128>}, {pipeline_mode = #tpu.pipeline_mode<synchronous>, transform_indices = @transform_2, window_bounds = array<i64: 48, 128>}, {pipeline_mode = #tpu.pipeline_mode<synchronous>, transform_indices = @transform_3, window_bounds = array<i64: 48, 32>}, {pipeline_mode = #tpu.pipeline_mode<synchronous>, transform_indices = @transform_4, window_bounds = array<i64: 48, 32>}, {pipeline_mode = #tpu.pipeline_mode<synchronous>, transform_indices = @transform_5, window_bounds = array<i64: 32, 16>}, {pipeline_mode = #tpu.pipeline_mode<synchronous>, transform_indices = @transform_6, window_bounds = array<i64: 32, 16>}, {transform_indices = @transform_7, window_bounds = array<i64: 1, 7, 128, 128>}, {transform_indices = @transform_8, window_bounds = array<i64: 1, 8, 1, 128>}, {transform_indices = @transform_9, window_bounds = array<i64: 1, 7, 128, 128>}, {transform_indices = @transform_10, window_bounds = array<i64: 1, 8, 1, 128>}, {pipeline_mode = #tpu.pipeline_mode<synchronous>, transform_indices = @transform_11, window_bounds = array<i64: 16, 128>}, {pipeline_mode = #tpu.pipeline_mode<synchronous>, transform_indices = @transform_12, window_bounds = array<i64: 32, 128>}, {pipeline_mode = #tpu.pipeline_mode<synchronous>, transform_indices = @transform_13, window_bounds = array<i64: 48, 128>}]} {
    %c0_i32 = arith.constant 0 : i32
    %0 = arith.cmpi eq, %arg0, %c0_i32 : i32
    %1 = arith.extui %0 : i1 to i32
    %c0_i32_0 = arith.constant 0 : i32
    %2 = arith.cmpi ne, %1, %c0_i32_0 : i32
    scf.if %2 {
      %c0_180 = arith.constant 0 : index
      %c0_181 = arith.constant 0 : index
      %255 = vector.load %arg1[%c0_180, %c0_181] : memref<16x128xf32, #tpu.memory_space<vmem>>, vector<16x128xf32>
      %c0_182 = arith.constant 0 : index
      %c0_183 = arith.constant 0 : index
      %256 = vector.load %arg12[%c0_182, %c0_183] : memref<16x128xf32, #tpu.memory_space<vmem>>, vector<16x128xf32>
      tpu.vector_store %arg12[%c0_182, %c0_183], %255 {strides = array<i32>} : memref<16x128xf32, #tpu.memory_space<vmem>>, vector<16x128xf32>,
      %c0_184 = arith.constant 0 : index
      %c0_185 = arith.constant 0 : index
      %257 = vector.load %arg2[%c0_184, %c0_185] : memref<32x128xf32, #tpu.memory_space<vmem>>, vector<32x128xf32>
      %c0_186 = arith.constant 0 : index
      %c0_187 = arith.constant 0 : index
      %258 = vector.load %arg13[%c0_186, %c0_187] : memref<32x128xf32, #tpu.memory_space<vmem>>, vector<32x128xf32>
      tpu.vector_store %arg13[%c0_186, %c0_187], %257 {strides = array<i32>} : memref<32x128xf32, #tpu.memory_space<vmem>>, vector<32x128xf32>,
      %c0_188 = arith.constant 0 : index
      %c0_189 = arith.constant 0 : index
      %259 = vector.load %arg3[%c0_188, %c0_189] : memref<48x128xf32, #tpu.memory_space<vmem>>, vector<48x128xf32>
      %c0_190 = arith.constant 0 : index
      %c0_191 = arith.constant 0 : index
      %260 = vector.load %arg14[%c0_190, %c0_191] : memref<48x128xf32, #tpu.memory_space<vmem>>, vector<48x128xf32>
      tpu.vector_store %arg14[%c0_190, %c0_191], %259 {strides = array<i32>} : memref<48x128xf32, #tpu.memory_space<vmem>>, vector<48x128xf32>,
    } else {
    }
    %c0 = arith.constant 0 : index
    %c0_1 = arith.constant 0 : index
    %3 = vector.load %arg13[%c0, %c0_1] : memref<32x128xf32, #tpu.memory_space<vmem>>, vector<32x128xf32>
    %c0_2 = arith.constant 0 : index
    %c0_3 = arith.constant 0 : index
    %4 = vector.load %arg14[%c0_2, %c0_3] : memref<48x128xf32, #tpu.memory_space<vmem>>, vector<48x128xf32>
    %c0_4 = arith.constant 0 : index
    %c0_5 = arith.constant 0 : index
    %5 = vector.load %arg4[%c0_4, %c0_5] : memref<48x32xbf16, #tpu.memory_space<vmem>>, vector<48x32xbf16>
    %c0_6 = arith.constant 0 : index
    %c0_7 = arith.constant 0 : index
    %6 = vector.load %arg5[%c0_6, %c0_7] : memref<48x32xbf16, #tpu.memory_space<vmem>>, vector<48x32xbf16>
    %c0_8 = arith.constant 0 : index
    %c0_9 = arith.constant 0 : index
    %c0_10 = arith.constant 0 : index
    %c0_11 = arith.constant 0 : index
    %7 = vector.load %arg8[%c0_8, %c0_9, %c0_10, %c0_11] : memref<1x7x128x128xbf16, #tpu.memory_space<vmem>>, vector<1x1x128x128xbf16>
    %8 = vector.shape_cast %7 : vector<1x1x128x128xbf16> to vector<128x128xbf16>
    %c0_12 = arith.constant 0 : index
    %c1 = arith.constant 1 : index
    %c0_13 = arith.constant 0 : index
    %c0_14 = arith.constant 0 : index
    %9 = vector.load %arg8[%c0_12, %c1, %c0_13, %c0_14] : memref<1x7x128x128xbf16, #tpu.memory_space<vmem>>, vector<1x1x128x128xbf16>
    %10 = vector.shape_cast %9 : vector<1x1x128x128xbf16> to vector<128x128xbf16>
    %c0_15 = arith.constant 0 : index
    %c2 = arith.constant 2 : index
    %c0_16 = arith.constant 0 : index
    %c0_17 = arith.constant 0 : index
    %11 = vector.load %arg8[%c0_15, %c2, %c0_16, %c0_17] : memref<1x7x128x128xbf16, #tpu.memory_space<vmem>>, vector<1x1x128x128xbf16>
    %12 = vector.shape_cast %11 : vector<1x1x128x128xbf16> to vector<128x128xbf16>
    %c0_18 = arith.constant 0 : index
    %c3 = arith.constant 3 : index
    %c0_19 = arith.constant 0 : index
    %c0_20 = arith.constant 0 : index
    %13 = vector.load %arg8[%c0_18, %c3, %c0_19, %c0_20] : memref<1x7x128x128xbf16, #tpu.memory_space<vmem>>, vector<1x1x128x128xbf16>
    %14 = vector.shape_cast %13 : vector<1x1x128x128xbf16> to vector<128x128xbf16>
    %c0_21 = arith.constant 0 : index
    %c4 = arith.constant 4 : index
    %c0_22 = arith.constant 0 : index
    %c0_23 = arith.constant 0 : index
    %15 = vector.load %arg8[%c0_21, %c4, %c0_22, %c0_23] : memref<1x7x128x128xbf16, #tpu.memory_space<vmem>>, vector<1x1x128x128xbf16>
    %16 = vector.shape_cast %15 : vector<1x1x128x128xbf16> to vector<128x128xbf16>
    %c0_24 = arith.constant 0 : index
    %c5 = arith.constant 5 : index
    %c0_25 = arith.constant 0 : index
    %c0_26 = arith.constant 0 : index
    %17 = vector.load %arg8[%c0_24, %c5, %c0_25, %c0_26] : memref<1x7x128x128xbf16, #tpu.memory_space<vmem>>, vector<1x1x128x128xbf16>
    %18 = vector.shape_cast %17 : vector<1x1x128x128xbf16> to vector<128x128xbf16>
    %c0_27 = arith.constant 0 : index
    %c6 = arith.constant 6 : index
    %c0_28 = arith.constant 0 : index
    %c0_29 = arith.constant 0 : index
    %19 = vector.load %arg8[%c0_27, %c6, %c0_28, %c0_29] : memref<1x7x128x128xbf16, #tpu.memory_space<vmem>>, vector<1x1x128x128xbf16>
    %20 = vector.shape_cast %19 : vector<1x1x128x128xbf16> to vector<128x128xbf16>
    %c0_30 = arith.constant 0 : index
    %c0_31 = arith.constant 0 : index
    %c0_32 = arith.constant 0 : index
    %c0_33 = arith.constant 0 : index
    %21 = vector.load %arg9[%c0_30, %c0_31, %c0_32, %c0_33] : memref<1x8x1x128xf32, #tpu.memory_space<vmem>>, vector<1x1x1x128xf32>
    %22 = vector.shape_cast %21 : vector<1x1x1x128xf32> to vector<1x128xf32>
    %c0_34 = arith.constant 0 : index
    %c1_35 = arith.constant 1 : index
    %c0_36 = arith.constant 0 : index
    %c0_37 = arith.constant 0 : index
    %23 = vector.load %arg9[%c0_34, %c1_35, %c0_36, %c0_37] : memref<1x8x1x128xf32, #tpu.memory_space<vmem>>, vector<1x1x1x128xf32>
    %24 = vector.shape_cast %23 : vector<1x1x1x128xf32> to vector<1x128xf32>
    %c0_38 = arith.constant 0 : index
    %c2_39 = arith.constant 2 : index
    %c0_40 = arith.constant 0 : index
    %c0_41 = arith.constant 0 : index
    %25 = vector.load %arg9[%c0_38, %c2_39, %c0_40, %c0_41] : memref<1x8x1x128xf32, #tpu.memory_space<vmem>>, vector<1x1x1x128xf32>
    %26 = vector.shape_cast %25 : vector<1x1x1x128xf32> to vector<1x128xf32>
    %c0_42 = arith.constant 0 : index
    %c3_43 = arith.constant 3 : index
    %c0_44 = arith.constant 0 : index
    %c0_45 = arith.constant 0 : index
    %27 = vector.load %arg9[%c0_42, %c3_43, %c0_44, %c0_45] : memref<1x8x1x128xf32, #tpu.memory_space<vmem>>, vector<1x1x1x128xf32>
    %28 = vector.shape_cast %27 : vector<1x1x1x128xf32> to vector<1x128xf32>
    %c0_46 = arith.constant 0 : index
    %c4_47 = arith.constant 4 : index
    %c0_48 = arith.constant 0 : index
    %c0_49 = arith.constant 0 : index
    %29 = vector.load %arg9[%c0_46, %c4_47, %c0_48, %c0_49] : memref<1x8x1x128xf32, #tpu.memory_space<vmem>>, vector<1x1x1x128xf32>
    %30 = vector.shape_cast %29 : vector<1x1x1x128xf32> to vector<1x128xf32>
    %c0_50 = arith.constant 0 : index
    %c5_51 = arith.constant 5 : index
    %c0_52 = arith.constant 0 : index
    %c0_53 = arith.constant 0 : index
    %31 = vector.load %arg9[%c0_50, %c5_51, %c0_52, %c0_53] : memref<1x8x1x128xf32, #tpu.memory_space<vmem>>, vector<1x1x1x128xf32>
    %32 = vector.shape_cast %31 : vector<1x1x1x128xf32> to vector<1x128xf32>
    %c0_54 = arith.constant 0 : index
    %c6_55 = arith.constant 6 : index
    %c0_56 = arith.constant 0 : index
    %c0_57 = arith.constant 0 : index
    %33 = vector.load %arg9[%c0_54, %c6_55, %c0_56, %c0_57] : memref<1x8x1x128xf32, #tpu.memory_space<vmem>>, vector<1x1x1x128xf32>
    %34 = vector.shape_cast %33 : vector<1x1x1x128xf32> to vector<1x128xf32>
    %c0_58 = arith.constant 0 : index
    %c7 = arith.constant 7 : index
    %c0_59 = arith.constant 0 : index
    %c0_60 = arith.constant 0 : index
    %35 = vector.load %arg9[%c0_58, %c7, %c0_59, %c0_60] : memref<1x8x1x128xf32, #tpu.memory_space<vmem>>, vector<1x1x1x128xf32>
    %36 = vector.shape_cast %35 : vector<1x1x1x128xf32> to vector<1x128xf32>
    %37 = arith.truncf %3 : vector<32x128xf32> to vector<32x128xbf16>
    %38 = arith.truncf %4 : vector<48x128xf32> to vector<48x128xbf16>
    %cst = arith.constant dense<0.000000e+00> : vector<32x128xf32>
    %39 = tpu.matmul %37, %8, %cst {dimension_numbers = #tpu.dot_dimension_numbers<[1], [0], [0], [1], [0, 0, 1, 1], [], []>} : vector<32x128xbf16>, vector<128x128xbf16>, vector<32x128xf32> -> vector<32x128xf32>
    %40 = arith.truncf %39 : vector<32x128xf32> to vector<32x128xbf16>
    %cst_61 = arith.constant dense<0.000000e+00> : vector<32x128xf32>
    %41 = tpu.matmul %37, %10, %cst_61 {dimension_numbers = #tpu.dot_dimension_numbers<[1], [0], [0], [1], [0, 0, 1, 1], [], []>} : vector<32x128xbf16>, vector<128x128xbf16>, vector<32x128xf32> -> vector<32x128xf32>
    %42 = arith.truncf %41 : vector<32x128xf32> to vector<32x128xbf16>
    %cst_62 = arith.constant dense<0.000000e+00> : vector<48x128xf32>
    %43 = tpu.matmul %6, %40, %cst_62 {dimension_numbers = #tpu.dot_dimension_numbers<[1], [0], [0], [1], [0, 0, 1, 1], [], []>} : vector<48x32xbf16>, vector<32x128xbf16>, vector<48x128xf32> -> vector<48x128xf32>
    %cst_63 = arith.constant dense<0.000000e+00> : vector<48x128xf32>
    %44 = tpu.matmul %5, %42, %cst_63 {dimension_numbers = #tpu.dot_dimension_numbers<[1], [0], [0], [1], [0, 0, 1, 1], [], []>} : vector<48x32xbf16>, vector<32x128xbf16>, vector<48x128xf32> -> vector<48x128xf32>
    %45 = arith.addf %43, %44 : vector<48x128xf32>
    %cst_64 = arith.constant dense<0.000000e+00> : vector<48x128xf32>
    %46 = tpu.matmul %38, %12, %cst_64 {dimension_numbers = #tpu.dot_dimension_numbers<[1], [0], [0], [1], [0, 0, 1, 1], [], []>} : vector<48x128xbf16>, vector<128x128xbf16>, vector<48x128xf32> -> vector<48x128xf32>
    %47 = arith.addf %45, %46 : vector<48x128xf32>
    %48 = vector.broadcast %22 : vector<1x128xf32> to vector<48x128xf32>
    %49 = arith.addf %47, %48 : vector<48x128xf32>
    %50 = arith.negf %49 : vector<48x128xf32>
    %51 = math.exp %50 : vector<48x128xf32>
    %cst_65 = arith.constant 1.000000e+00 : f32
    %52 = vector.broadcast %cst_65 : f32 to vector<48x128xf32>
    %53 = arith.addf %52, %51 : vector<48x128xf32>
    %54 = arith.divf %52, %53 : vector<48x128xf32>
    %55 = arith.mulf %49, %54 : vector<48x128xf32>
    %56 = arith.truncf %55 : vector<48x128xf32> to vector<48x128xbf16>
    %cst_66 = arith.constant dense<0.000000e+00> : vector<48x128xf32>
    %57 = tpu.matmul %56, %14, %cst_66 {dimension_numbers = #tpu.dot_dimension_numbers<[1], [0], [0], [1], [0, 0, 1, 1], [], []>} : vector<48x128xbf16>, vector<128x128xbf16>, vector<48x128xf32> -> vector<48x128xf32>
    %58 = vector.broadcast %24 : vector<1x128xf32> to vector<48x128xf32>
    %59 = arith.addf %57, %58 : vector<48x128xf32>
    %cst_67 = arith.constant dense<0.000000e+00> : vector<48xf32>
    %60 = vector.multi_reduction <add>, %59, %cst_67 [1] : vector<48x128xf32> to vector<48xf32>
    %61 = vector.shape_cast %60 : vector<48xf32> to vector<48x1xf32>
    %cst_68 = arith.constant 3.125000e-02 : f32
    %62 = vector.broadcast %cst_68 : f32 to vector<48x1xf32>
    %63 = arith.mulf %61, %62 : vector<48x1xf32>
    %64 = vector.broadcast %63 : vector<48x1xf32> to vector<48x128xf32>
    %65 = arith.subf %59, %64 : vector<48x128xf32>
    %66 = arith.mulf %65, %65 : vector<48x128xf32>
    %cst_69 = arith.constant dense<0.000000e+00> : vector<48xf32>
    %67 = vector.multi_reduction <add>, %66, %cst_69 [1] : vector<48x128xf32> to vector<48xf32>
    %68 = vector.shape_cast %67 : vector<48xf32> to vector<48x1xf32>
    %cst_70 = arith.constant 9.600000e+01 : f32
    %69 = vector.broadcast %cst_70 : f32 to vector<48x1xf32>
    %70 = arith.mulf %69, %63 : vector<48x1xf32>
    %71 = arith.mulf %70, %63 : vector<48x1xf32>
    %72 = arith.subf %68, %71 : vector<48x1xf32>
    %cst_71 = arith.constant 3.125000e-02 : f32
    %73 = vector.broadcast %cst_71 : f32 to vector<48x1xf32>
    %74 = arith.mulf %72, %73 : vector<48x1xf32>
    %cst_72 = arith.constant 9.99999974E-6 : f32
    %75 = vector.broadcast %cst_72 : f32 to vector<48x1xf32>
    %76 = arith.addf %74, %75 : vector<48x1xf32>
    %77 = math.rsqrt %76 : vector<48x1xf32>
    %78 = vector.broadcast %77 : vector<48x1xf32> to vector<48x128xf32>
    %79 = arith.mulf %65, %78 : vector<48x128xf32>
    %80 = vector.broadcast %26 : vector<1x128xf32> to vector<48x128xf32>
    %81 = arith.mulf %79, %80 : vector<48x128xf32>
    %82 = vector.broadcast %28 : vector<1x128xf32> to vector<48x128xf32>
    %83 = arith.addf %81, %82 : vector<48x128xf32>
    %84 = arith.addf %4, %83 : vector<48x128xf32>
    %85 = arith.truncf %84 : vector<48x128xf32> to vector<48x128xbf16>
    %cst_73 = arith.constant dense<0.000000e+00> : vector<32x128xf32>
    %86 = tpu.matmul %6, %85, %cst_73 {dimension_numbers = #tpu.dot_dimension_numbers<[0], [0], [1], [1], [0, 1, 1, 1], [], []>} : vector<48x32xbf16>, vector<48x128xbf16>, vector<32x128xf32> -> vector<32x128xf32>
    %cst_74 = arith.constant dense<0.000000e+00> : vector<32x128xf32>
    %87 = tpu.matmul %37, %16, %cst_74 {dimension_numbers = #tpu.dot_dimension_numbers<[1], [0], [0], [1], [0, 0, 1, 1], [], []>} : vector<32x128xbf16>, vector<128x128xbf16>, vector<32x128xf32> -> vector<32x128xf32>
    %88 = arith.truncf %86 : vector<32x128xf32> to vector<32x128xbf16>
    %cst_75 = arith.constant dense<0.000000e+00> : vector<32x128xf32>
    %89 = tpu.matmul %88, %18, %cst_75 {dimension_numbers = #tpu.dot_dimension_numbers<[1], [0], [0], [1], [0, 0, 1, 1], [], []>} : vector<32x128xbf16>, vector<128x128xbf16>, vector<32x128xf32> -> vector<32x128xf32>
    %90 = arith.addf %87, %89 : vector<32x128xf32>
    %91 = vector.broadcast %30 : vector<1x128xf32> to vector<32x128xf32>
    %92 = arith.addf %90, %91 : vector<32x128xf32>
    %93 = arith.negf %92 : vector<32x128xf32>
    %94 = math.exp %93 : vector<32x128xf32>
    %cst_76 = arith.constant 1.000000e+00 : f32
    %95 = vector.broadcast %cst_76 : f32 to vector<32x128xf32>
    %96 = arith.addf %95, %94 : vector<32x128xf32>
    %97 = arith.divf %95, %96 : vector<32x128xf32>
    %98 = arith.mulf %92, %97 : vector<32x128xf32>
    %99 = arith.truncf %98 : vector<32x128xf32> to vector<32x128xbf16>
    %cst_77 = arith.constant dense<0.000000e+00> : vector<32x128xf32>
    %100 = tpu.matmul %99, %20, %cst_77 {dimension_numbers = #tpu.dot_dimension_numbers<[1], [0], [0], [1], [0, 0, 1, 1], [], []>} : vector<32x128xbf16>, vector<128x128xbf16>, vector<32x128xf32> -> vector<32x128xf32>
    %101 = vector.broadcast %32 : vector<1x128xf32> to vector<32x128xf32>
    %102 = arith.addf %100, %101 : vector<32x128xf32>
    %cst_78 = arith.constant dense<0.000000e+00> : vector<32xf32>
    %103 = vector.multi_reduction <add>, %102, %cst_78 [1] : vector<32x128xf32> to vector<32xf32>
    %104 = vector.shape_cast %103 : vector<32xf32> to vector<32x1xf32>
    %cst_79 = arith.constant 3.125000e-02 : f32
    %105 = vector.broadcast %cst_79 : f32 to vector<32x1xf32>
    %106 = arith.mulf %104, %105 : vector<32x1xf32>
    %107 = vector.broadcast %106 : vector<32x1xf32> to vector<32x128xf32>
    %108 = arith.subf %102, %107 : vector<32x128xf32>
    %109 = arith.mulf %108, %108 : vector<32x128xf32>
    %cst_80 = arith.constant dense<0.000000e+00> : vector<32xf32>
    %110 = vector.multi_reduction <add>, %109, %cst_80 [1] : vector<32x128xf32> to vector<32xf32>
    %111 = vector.shape_cast %110 : vector<32xf32> to vector<32x1xf32>
    %cst_81 = arith.constant 9.600000e+01 : f32
    %112 = vector.broadcast %cst_81 : f32 to vector<32x1xf32>
    %113 = arith.mulf %112, %106 : vector<32x1xf32>
    %114 = arith.mulf %113, %106 : vector<32x1xf32>
    %115 = arith.subf %111, %114 : vector<32x1xf32>
    %cst_82 = arith.constant 3.125000e-02 : f32
    %116 = vector.broadcast %cst_82 : f32 to vector<32x1xf32>
    %117 = arith.mulf %115, %116 : vector<32x1xf32>
    %cst_83 = arith.constant 9.99999974E-6 : f32
    %118 = vector.broadcast %cst_83 : f32 to vector<32x1xf32>
    %119 = arith.addf %117, %118 : vector<32x1xf32>
    %120 = math.rsqrt %119 : vector<32x1xf32>
    %121 = vector.broadcast %120 : vector<32x1xf32> to vector<32x128xf32>
    %122 = arith.mulf %108, %121 : vector<32x128xf32>
    %123 = vector.broadcast %34 : vector<1x128xf32> to vector<32x128xf32>
    %124 = arith.mulf %122, %123 : vector<32x128xf32>
    %125 = vector.broadcast %36 : vector<1x128xf32> to vector<32x128xf32>
    %126 = arith.addf %124, %125 : vector<32x128xf32>
    %127 = arith.addf %3, %126 : vector<32x128xf32>
    %c0_84 = arith.constant 0 : index
    %c0_85 = arith.constant 0 : index
    %128 = vector.load %arg12[%c0_84, %c0_85] : memref<16x128xf32, #tpu.memory_space<vmem>>, vector<16x128xf32>
    %c0_86 = arith.constant 0 : index
    %c0_87 = arith.constant 0 : index
    %129 = vector.load %arg6[%c0_86, %c0_87] : memref<32x16xbf16, #tpu.memory_space<vmem>>, vector<32x16xbf16>
    %c0_88 = arith.constant 0 : index
    %c0_89 = arith.constant 0 : index
    %130 = vector.load %arg7[%c0_88, %c0_89] : memref<32x16xbf16, #tpu.memory_space<vmem>>, vector<32x16xbf16>
    %c0_90 = arith.constant 0 : index
    %c0_91 = arith.constant 0 : index
    %c0_92 = arith.constant 0 : index
    %c0_93 = arith.constant 0 : index
    %131 = vector.load %arg10[%c0_90, %c0_91, %c0_92, %c0_93] : memref<1x7x128x128xbf16, #tpu.memory_space<vmem>>, vector<1x1x128x128xbf16>
    %132 = vector.shape_cast %131 : vector<1x1x128x128xbf16> to vector<128x128xbf16>
    %c0_94 = arith.constant 0 : index
    %c1_95 = arith.constant 1 : index
    %c0_96 = arith.constant 0 : index
    %c0_97 = arith.constant 0 : index
    %133 = vector.load %arg10[%c0_94, %c1_95, %c0_96, %c0_97] : memref<1x7x128x128xbf16, #tpu.memory_space<vmem>>, vector<1x1x128x128xbf16>
    %134 = vector.shape_cast %133 : vector<1x1x128x128xbf16> to vector<128x128xbf16>
    %c0_98 = arith.constant 0 : index
    %c2_99 = arith.constant 2 : index
    %c0_100 = arith.constant 0 : index
    %c0_101 = arith.constant 0 : index
    %135 = vector.load %arg10[%c0_98, %c2_99, %c0_100, %c0_101] : memref<1x7x128x128xbf16, #tpu.memory_space<vmem>>, vector<1x1x128x128xbf16>
    %136 = vector.shape_cast %135 : vector<1x1x128x128xbf16> to vector<128x128xbf16>
    %c0_102 = arith.constant 0 : index
    %c3_103 = arith.constant 3 : index
    %c0_104 = arith.constant 0 : index
    %c0_105 = arith.constant 0 : index
    %137 = vector.load %arg10[%c0_102, %c3_103, %c0_104, %c0_105] : memref<1x7x128x128xbf16, #tpu.memory_space<vmem>>, vector<1x1x128x128xbf16>
    %138 = vector.shape_cast %137 : vector<1x1x128x128xbf16> to vector<128x128xbf16>
    %c0_106 = arith.constant 0 : index
    %c4_107 = arith.constant 4 : index
    %c0_108 = arith.constant 0 : index
    %c0_109 = arith.constant 0 : index
    %139 = vector.load %arg10[%c0_106, %c4_107, %c0_108, %c0_109] : memref<1x7x128x128xbf16, #tpu.memory_space<vmem>>, vector<1x1x128x128xbf16>
    %140 = vector.shape_cast %139 : vector<1x1x128x128xbf16> to vector<128x128xbf16>
    %c0_110 = arith.constant 0 : index
    %c5_111 = arith.constant 5 : index
    %c0_112 = arith.constant 0 : index
    %c0_113 = arith.constant 0 : index
    %141 = vector.load %arg10[%c0_110, %c5_111, %c0_112, %c0_113] : memref<1x7x128x128xbf16, #tpu.memory_space<vmem>>, vector<1x1x128x128xbf16>
    %142 = vector.shape_cast %141 : vector<1x1x128x128xbf16> to vector<128x128xbf16>
    %c0_114 = arith.constant 0 : index
    %c6_115 = arith.constant 6 : index
    %c0_116 = arith.constant 0 : index
    %c0_117 = arith.constant 0 : index
    %143 = vector.load %arg10[%c0_114, %c6_115, %c0_116, %c0_117] : memref<1x7x128x128xbf16, #tpu.memory_space<vmem>>, vector<1x1x128x128xbf16>
    %144 = vector.shape_cast %143 : vector<1x1x128x128xbf16> to vector<128x128xbf16>
    %c0_118 = arith.constant 0 : index
    %c0_119 = arith.constant 0 : index
    %c0_120 = arith.constant 0 : index
    %c0_121 = arith.constant 0 : index
    %145 = vector.load %arg11[%c0_118, %c0_119, %c0_120, %c0_121] : memref<1x8x1x128xf32, #tpu.memory_space<vmem>>, vector<1x1x1x128xf32>
    %146 = vector.shape_cast %145 : vector<1x1x1x128xf32> to vector<1x128xf32>
    %c0_122 = arith.constant 0 : index
    %c1_123 = arith.constant 1 : index
    %c0_124 = arith.constant 0 : index
    %c0_125 = arith.constant 0 : index
    %147 = vector.load %arg11[%c0_122, %c1_123, %c0_124, %c0_125] : memref<1x8x1x128xf32, #tpu.memory_space<vmem>>, vector<1x1x1x128xf32>
    %148 = vector.shape_cast %147 : vector<1x1x1x128xf32> to vector<1x128xf32>
    %c0_126 = arith.constant 0 : index
    %c2_127 = arith.constant 2 : index
    %c0_128 = arith.constant 0 : index
    %c0_129 = arith.constant 0 : index
    %149 = vector.load %arg11[%c0_126, %c2_127, %c0_128, %c0_129] : memref<1x8x1x128xf32, #tpu.memory_space<vmem>>, vector<1x1x1x128xf32>
    %150 = vector.shape_cast %149 : vector<1x1x1x128xf32> to vector<1x128xf32>
    %c0_130 = arith.constant 0 : index
    %c3_131 = arith.constant 3 : index
    %c0_132 = arith.constant 0 : index
    %c0_133 = arith.constant 0 : index
    %151 = vector.load %arg11[%c0_130, %c3_131, %c0_132, %c0_133] : memref<1x8x1x128xf32, #tpu.memory_space<vmem>>, vector<1x1x1x128xf32>
    %152 = vector.shape_cast %151 : vector<1x1x1x128xf32> to vector<1x128xf32>
    %c0_134 = arith.constant 0 : index
    %c4_135 = arith.constant 4 : index
    %c0_136 = arith.constant 0 : index
    %c0_137 = arith.constant 0 : index
    %153 = vector.load %arg11[%c0_134, %c4_135, %c0_136, %c0_137] : memref<1x8x1x128xf32, #tpu.memory_space<vmem>>, vector<1x1x1x128xf32>
    %154 = vector.shape_cast %153 : vector<1x1x1x128xf32> to vector<1x128xf32>
    %c0_138 = arith.constant 0 : index
    %c5_139 = arith.constant 5 : index
    %c0_140 = arith.constant 0 : index
    %c0_141 = arith.constant 0 : index
    %155 = vector.load %arg11[%c0_138, %c5_139, %c0_140, %c0_141] : memref<1x8x1x128xf32, #tpu.memory_space<vmem>>, vector<1x1x1x128xf32>
    %156 = vector.shape_cast %155 : vector<1x1x1x128xf32> to vector<1x128xf32>
    %c0_142 = arith.constant 0 : index
    %c6_143 = arith.constant 6 : index
    %c0_144 = arith.constant 0 : index
    %c0_145 = arith.constant 0 : index
    %157 = vector.load %arg11[%c0_142, %c6_143, %c0_144, %c0_145] : memref<1x8x1x128xf32, #tpu.memory_space<vmem>>, vector<1x1x1x128xf32>
    %158 = vector.shape_cast %157 : vector<1x1x1x128xf32> to vector<1x128xf32>
    %c0_146 = arith.constant 0 : index
    %c7_147 = arith.constant 7 : index
    %c0_148 = arith.constant 0 : index
    %c0_149 = arith.constant 0 : index
    %159 = vector.load %arg11[%c0_146, %c7_147, %c0_148, %c0_149] : memref<1x8x1x128xf32, #tpu.memory_space<vmem>>, vector<1x1x1x128xf32>
    %160 = vector.shape_cast %159 : vector<1x1x1x128xf32> to vector<1x128xf32>
    %161 = arith.truncf %128 : vector<16x128xf32> to vector<16x128xbf16>
    %162 = arith.truncf %127 : vector<32x128xf32> to vector<32x128xbf16>
    %cst_150 = arith.constant dense<0.000000e+00> : vector<16x128xf32>
    %163 = tpu.matmul %161, %132, %cst_150 {dimension_numbers = #tpu.dot_dimension_numbers<[1], [0], [0], [1], [0, 0, 1, 1], [], []>} : vector<16x128xbf16>, vector<128x128xbf16>, vector<16x128xf32> -> vector<16x128xf32>
    %164 = arith.truncf %163 : vector<16x128xf32> to vector<16x128xbf16>
    %cst_151 = arith.constant dense<0.000000e+00> : vector<16x128xf32>
    %165 = tpu.matmul %161, %134, %cst_151 {dimension_numbers = #tpu.dot_dimension_numbers<[1], [0], [0], [1], [0, 0, 1, 1], [], []>} : vector<16x128xbf16>, vector<128x128xbf16>, vector<16x128xf32> -> vector<16x128xf32>
    %166 = arith.truncf %165 : vector<16x128xf32> to vector<16x128xbf16>
    %cst_152 = arith.constant dense<0.000000e+00> : vector<32x128xf32>
    %167 = tpu.matmul %130, %164, %cst_152 {dimension_numbers = #tpu.dot_dimension_numbers<[1], [0], [0], [1], [0, 0, 1, 1], [], []>} : vector<32x16xbf16>, vector<16x128xbf16>, vector<32x128xf32> -> vector<32x128xf32>
    %cst_153 = arith.constant dense<0.000000e+00> : vector<32x128xf32>
    %168 = tpu.matmul %129, %166, %cst_153 {dimension_numbers = #tpu.dot_dimension_numbers<[1], [0], [0], [1], [0, 0, 1, 1], [], []>} : vector<32x16xbf16>, vector<16x128xbf16>, vector<32x128xf32> -> vector<32x128xf32>
    %169 = arith.addf %167, %168 : vector<32x128xf32>
    %cst_154 = arith.constant dense<0.000000e+00> : vector<32x128xf32>
    %170 = tpu.matmul %162, %136, %cst_154 {dimension_numbers = #tpu.dot_dimension_numbers<[1], [0], [0], [1], [0, 0, 1, 1], [], []>} : vector<32x128xbf16>, vector<128x128xbf16>, vector<32x128xf32> -> vector<32x128xf32>
    %171 = arith.addf %169, %170 : vector<32x128xf32>
    %172 = vector.broadcast %146 : vector<1x128xf32> to vector<32x128xf32>
    %173 = arith.addf %171, %172 : vector<32x128xf32>
    %174 = arith.negf %173 : vector<32x128xf32>
    %175 = math.exp %174 : vector<32x128xf32>
    %cst_155 = arith.constant 1.000000e+00 : f32
    %176 = vector.broadcast %cst_155 : f32 to vector<32x128xf32>
    %177 = arith.addf %176, %175 : vector<32x128xf32>
    %178 = arith.divf %176, %177 : vector<32x128xf32>
    %179 = arith.mulf %173, %178 : vector<32x128xf32>
    %180 = arith.truncf %179 : vector<32x128xf32> to vector<32x128xbf16>
    %cst_156 = arith.constant dense<0.000000e+00> : vector<32x128xf32>
    %181 = tpu.matmul %180, %138, %cst_156 {dimension_numbers = #tpu.dot_dimension_numbers<[1], [0], [0], [1], [0, 0, 1, 1], [], []>} : vector<32x128xbf16>, vector<128x128xbf16>, vector<32x128xf32> -> vector<32x128xf32>
    %182 = vector.broadcast %148 : vector<1x128xf32> to vector<32x128xf32>
    %183 = arith.addf %181, %182 : vector<32x128xf32>
    %cst_157 = arith.constant dense<0.000000e+00> : vector<32xf32>
    %184 = vector.multi_reduction <add>, %183, %cst_157 [1] : vector<32x128xf32> to vector<32xf32>
    %185 = vector.shape_cast %184 : vector<32xf32> to vector<32x1xf32>
    %cst_158 = arith.constant 3.125000e-02 : f32
    %186 = vector.broadcast %cst_158 : f32 to vector<32x1xf32>
    %187 = arith.mulf %185, %186 : vector<32x1xf32>
    %188 = vector.broadcast %187 : vector<32x1xf32> to vector<32x128xf32>
    %189 = arith.subf %183, %188 : vector<32x128xf32>
    %190 = arith.mulf %189, %189 : vector<32x128xf32>
    %cst_159 = arith.constant dense<0.000000e+00> : vector<32xf32>
    %191 = vector.multi_reduction <add>, %190, %cst_159 [1] : vector<32x128xf32> to vector<32xf32>
    %192 = vector.shape_cast %191 : vector<32xf32> to vector<32x1xf32>
    %cst_160 = arith.constant 9.600000e+01 : f32
    %193 = vector.broadcast %cst_160 : f32 to vector<32x1xf32>
    %194 = arith.mulf %193, %187 : vector<32x1xf32>
    %195 = arith.mulf %194, %187 : vector<32x1xf32>
    %196 = arith.subf %192, %195 : vector<32x1xf32>
    %cst_161 = arith.constant 3.125000e-02 : f32
    %197 = vector.broadcast %cst_161 : f32 to vector<32x1xf32>
    %198 = arith.mulf %196, %197 : vector<32x1xf32>
    %cst_162 = arith.constant 9.99999974E-6 : f32
    %199 = vector.broadcast %cst_162 : f32 to vector<32x1xf32>
    %200 = arith.addf %198, %199 : vector<32x1xf32>
    %201 = math.rsqrt %200 : vector<32x1xf32>
    %202 = vector.broadcast %201 : vector<32x1xf32> to vector<32x128xf32>
    %203 = arith.mulf %189, %202 : vector<32x128xf32>
    %204 = vector.broadcast %150 : vector<1x128xf32> to vector<32x128xf32>
    %205 = arith.mulf %203, %204 : vector<32x128xf32>
    %206 = vector.broadcast %152 : vector<1x128xf32> to vector<32x128xf32>
    %207 = arith.addf %205, %206 : vector<32x128xf32>
    %208 = arith.addf %127, %207 : vector<32x128xf32>
    %209 = arith.truncf %208 : vector<32x128xf32> to vector<32x128xbf16>
    %cst_163 = arith.constant dense<0.000000e+00> : vector<16x128xf32>
    %210 = tpu.matmul %130, %209, %cst_163 {dimension_numbers = #tpu.dot_dimension_numbers<[0], [0], [1], [1], [0, 1, 1, 1], [], []>} : vector<32x16xbf16>, vector<32x128xbf16>, vector<16x128xf32> -> vector<16x128xf32>
    %cst_164 = arith.constant dense<0.000000e+00> : vector<16x128xf32>
    %211 = tpu.matmul %161, %140, %cst_164 {dimension_numbers = #tpu.dot_dimension_numbers<[1], [0], [0], [1], [0, 0, 1, 1], [], []>} : vector<16x128xbf16>, vector<128x128xbf16>, vector<16x128xf32> -> vector<16x128xf32>
    %212 = arith.truncf %210 : vector<16x128xf32> to vector<16x128xbf16>
    %cst_165 = arith.constant dense<0.000000e+00> : vector<16x128xf32>
    %213 = tpu.matmul %212, %142, %cst_165 {dimension_numbers = #tpu.dot_dimension_numbers<[1], [0], [0], [1], [0, 0, 1, 1], [], []>} : vector<16x128xbf16>, vector<128x128xbf16>, vector<16x128xf32> -> vector<16x128xf32>
    %214 = arith.addf %211, %213 : vector<16x128xf32>
    %215 = vector.broadcast %154 : vector<1x128xf32> to vector<16x128xf32>
    %216 = arith.addf %214, %215 : vector<16x128xf32>
    %217 = arith.negf %216 : vector<16x128xf32>
    %218 = math.exp %217 : vector<16x128xf32>
    %cst_166 = arith.constant 1.000000e+00 : f32
    %219 = vector.broadcast %cst_166 : f32 to vector<16x128xf32>
    %220 = arith.addf %219, %218 : vector<16x128xf32>
    %221 = arith.divf %219, %220 : vector<16x128xf32>
    %222 = arith.mulf %216, %221 : vector<16x128xf32>
    %223 = arith.truncf %222 : vector<16x128xf32> to vector<16x128xbf16>
    %cst_167 = arith.constant dense<0.000000e+00> : vector<16x128xf32>
    %224 = tpu.matmul %223, %144, %cst_167 {dimension_numbers = #tpu.dot_dimension_numbers<[1], [0], [0], [1], [0, 0, 1, 1], [], []>} : vector<16x128xbf16>, vector<128x128xbf16>, vector<16x128xf32> -> vector<16x128xf32>
    %225 = vector.broadcast %156 : vector<1x128xf32> to vector<16x128xf32>
    %226 = arith.addf %224, %225 : vector<16x128xf32>
    %cst_168 = arith.constant dense<0.000000e+00> : vector<16xf32>
    %227 = vector.multi_reduction <add>, %226, %cst_168 [1] : vector<16x128xf32> to vector<16xf32>
    %228 = vector.shape_cast %227 : vector<16xf32> to vector<16x1xf32>
    %cst_169 = arith.constant 3.125000e-02 : f32
    %229 = vector.broadcast %cst_169 : f32 to vector<16x1xf32>
    %230 = arith.mulf %228, %229 : vector<16x1xf32>
    %231 = vector.broadcast %230 : vector<16x1xf32> to vector<16x128xf32>
    %232 = arith.subf %226, %231 : vector<16x128xf32>
    %233 = arith.mulf %232, %232 : vector<16x128xf32>
    %cst_170 = arith.constant dense<0.000000e+00> : vector<16xf32>
    %234 = vector.multi_reduction <add>, %233, %cst_170 [1] : vector<16x128xf32> to vector<16xf32>
    %235 = vector.shape_cast %234 : vector<16xf32> to vector<16x1xf32>
    %cst_171 = arith.constant 9.600000e+01 : f32
    %236 = vector.broadcast %cst_171 : f32 to vector<16x1xf32>
    %237 = arith.mulf %236, %230 : vector<16x1xf32>
    %238 = arith.mulf %237, %230 : vector<16x1xf32>
    %239 = arith.subf %235, %238 : vector<16x1xf32>
    %cst_172 = arith.constant 3.125000e-02 : f32
    %240 = vector.broadcast %cst_172 : f32 to vector<16x1xf32>
    %241 = arith.mulf %239, %240 : vector<16x1xf32>
    %cst_173 = arith.constant 9.99999974E-6 : f32
    %242 = vector.broadcast %cst_173 : f32 to vector<16x1xf32>
    %243 = arith.addf %241, %242 : vector<16x1xf32>
    %244 = math.rsqrt %243 : vector<16x1xf32>
    %245 = vector.broadcast %244 : vector<16x1xf32> to vector<16x128xf32>
    %246 = arith.mulf %232, %245 : vector<16x128xf32>
    %247 = vector.broadcast %158 : vector<1x128xf32> to vector<16x128xf32>
    %248 = arith.mulf %246, %247 : vector<16x128xf32>
    %249 = vector.broadcast %160 : vector<1x128xf32> to vector<16x128xf32>
    %250 = arith.addf %248, %249 : vector<16x128xf32>
    %251 = arith.addf %128, %250 : vector<16x128xf32>
    %c0_174 = arith.constant 0 : index
    %c0_175 = arith.constant 0 : index
    %252 = vector.load %arg14[%c0_174, %c0_175] : memref<48x128xf32, #tpu.memory_space<vmem>>, vector<48x128xf32>
    tpu.vector_store %arg14[%c0_174, %c0_175], %84 {strides = array<i32>} : memref<48x128xf32, #tpu.memory_space<vmem>>, vector<48x128xf32>,
    %c0_176 = arith.constant 0 : index
    %c0_177 = arith.constant 0 : index
    %253 = vector.load %arg13[%c0_176, %c0_177] : memref<32x128xf32, #tpu.memory_space<vmem>>, vector<32x128xf32>
    tpu.vector_store %arg13[%c0_176, %c0_177], %208 {strides = array<i32>} : memref<32x128xf32, #tpu.memory_space<vmem>>, vector<32x128xf32>,
    %c0_178 = arith.constant 0 : index
    %c0_179 = arith.constant 0 : index
    %254 = vector.load %arg12[%c0_178, %c0_179] : memref<16x128xf32, #tpu.memory_space<vmem>>, vector<16x128xf32>
    tpu.vector_store %arg12[%c0_178, %c0_179], %251 {strides = array<i32>} : memref<16x128xf32, #tpu.memory_space<vmem>>, vector<16x128xf32>,
    return
  }
  func.func @transform_0(%arg0: i32) -> (i32, i32) {
    %c0_i32 = arith.constant 0 : i32
    %c0_i32_0 = arith.constant 0 : i32
    %c0_i32_1 = arith.constant 0 : i32
    return %c0_i32, %c0_i32_0 : i32, i32
  }
  func.func @transform_1(%arg0: i32) -> (i32, i32) {
    %c0_i32 = arith.constant 0 : i32
    %c0_i32_0 = arith.constant 0 : i32
    %c0_i32_1 = arith.constant 0 : i32
    return %c0_i32, %c0_i32_0 : i32, i32
  }
  func.func @transform_2(%arg0: i32) -> (i32, i32) {
    %c0_i32 = arith.constant 0 : i32
    %c0_i32_0 = arith.constant 0 : i32
    %c0_i32_1 = arith.constant 0 : i32
    return %c0_i32, %c0_i32_0 : i32, i32
  }
  func.func @transform_3(%arg0: i32) -> (i32, i32) {
    %c0_i32 = arith.constant 0 : i32
    %c0_i32_0 = arith.constant 0 : i32
    %c0_i32_1 = arith.constant 0 : i32
    return %c0_i32, %c0_i32_0 : i32, i32
  }
  func.func @transform_4(%arg0: i32) -> (i32, i32) {
    %c0_i32 = arith.constant 0 : i32
    %c0_i32_0 = arith.constant 0 : i32
    %c0_i32_1 = arith.constant 0 : i32
    return %c0_i32, %c0_i32_0 : i32, i32
  }
  func.func @transform_5(%arg0: i32) -> (i32, i32) {
    %c0_i32 = arith.constant 0 : i32
    %c0_i32_0 = arith.constant 0 : i32
    %c0_i32_1 = arith.constant 0 : i32
    return %c0_i32, %c0_i32_0 : i32, i32
  }
  func.func @transform_6(%arg0: i32) -> (i32, i32) {
    %c0_i32 = arith.constant 0 : i32
    %c0_i32_0 = arith.constant 0 : i32
    %c0_i32_1 = arith.constant 0 : i32
    return %c0_i32, %c0_i32_0 : i32, i32
  }
  func.func @transform_7(%arg0: i32) -> (i32, i32, i32, i32) {
    %c0_i32 = arith.constant 0 : i32
    %c0_i32_0 = arith.constant 0 : i32
    %c0_i32_1 = arith.constant 0 : i32
    %c0_i32_2 = arith.constant 0 : i32
    return %arg0, %c0_i32, %c0_i32_0, %c0_i32_1 : i32, i32, i32, i32
  }
  func.func @transform_8(%arg0: i32) -> (i32, i32, i32, i32) {
    %c0_i32 = arith.constant 0 : i32
    %c0_i32_0 = arith.constant 0 : i32
    %c0_i32_1 = arith.constant 0 : i32
    %c0_i32_2 = arith.constant 0 : i32
    return %arg0, %c0_i32, %c0_i32_0, %c0_i32_1 : i32, i32, i32, i32
  }
  func.func @transform_9(%arg0: i32) -> (i32, i32, i32, i32) {
    %c0_i32 = arith.constant 0 : i32
    %c0_i32_0 = arith.constant 0 : i32
    %c0_i32_1 = arith.constant 0 : i32
    %c0_i32_2 = arith.constant 0 : i32
    return %arg0, %c0_i32, %c0_i32_0, %c0_i32_1 : i32, i32, i32, i32
  }
  func.func @transform_10(%arg0: i32) -> (i32, i32, i32, i32) {
    %c0_i32 = arith.constant 0 : i32
    %c0_i32_0 = arith.constant 0 : i32
    %c0_i32_1 = arith.constant 0 : i32
    %c0_i32_2 = arith.constant 0 : i32
    return %arg0, %c0_i32, %c0_i32_0, %c0_i32_1 : i32, i32, i32, i32
  }
  func.func @transform_11(%arg0: i32) -> (i32, i32) {
    %c0_i32 = arith.constant 0 : i32
    %c0_i32_0 = arith.constant 0 : i32
    %c0_i32_1 = arith.constant 0 : i32
    return %c0_i32, %c0_i32_0 : i32, i32
  }
  func.func @transform_12(%arg0: i32) -> (i32, i32) {
    %c0_i32 = arith.constant 0 : i32
    %c0_i32_0 = arith.constant 0 : i32
    %c0_i32_1 = arith.constant 0 : i32
    return %c0_i32, %c0_i32_0 : i32, i32
  }
  func.func @transform_13(%arg0: i32) -> (i32, i32) {
    %c0_i32 = arith.constant 0 : i32
    %c0_i32_0 = arith.constant 0 : i32
    %c0_i32_1 = arith.constant 0 : i32
    return %c0_i32, %c0_i32_0 : i32, i32
  }
}

</mosaic_0001>

<bundles_post_ra>
// kernel: processor_forward.1
= control target key start
LH: loop header
LB: loop body
LE: loop exit
PB: predicated region body
PF: predicated region fallthrough
CT: control target
= control target key end

     0   :  { %s5159_s0 = inlined_call_operand.vmem [shape: f32[16,128], index: 0, kind: input, shape index: {}]   ;;  %s5160_s1 = inlined_call_operand.vmem [shape: f32[32,128], index: 1, kind: input, shape index: {}]   ;;  %s5161_s2 = inlined_call_operand.vmem [shape: f32[48,128], index: 2, kind: input, shape index: {}]   ;;  %s5162_s3 = inlined_call_operand.vmem [shape: bf16[48,32], index: 3, kind: input, shape index: {}]   ;;  %s5163_s4 = inlined_call_operand.vmem [shape: bf16[48,32], index: 4, kind: input, shape index: {}]   ;;  %s5164_s5 = inlined_call_operand.vmem [shape: bf16[32,16], index: 5, kind: input, shape index: {}]   ;;  %s5165_s6 = inlined_call_operand.vmem [shape: bf16[32,16], index: 6, kind: input, shape index: {}]   ;;  %s5166_s7 = inlined_call_operand.vmem [shape: bf16[2,7,128,128], index: 7, kind: input, shape index: {}]   ;;  %s5167_s8 = inlined_call_operand.vmem [shape: f32[2,8,1,128], index: 8, kind: input, shape index: {}]   ;;  %s5168_s9 = inlined_call_operand.vmem [shape: bf16[2,7,128,128], index: 9, kind: input, shape index: {}]   ;;  %s5169_s10 = inlined_call_operand.vmem [shape: f32[2,8,1,128], index: 10, kind: input, shape index: {}]   ;;  %s5170_s11 = inlined_call_operand.hbm [shape: f32[16,128], index: 11, kind: output, shape index: {0}]   ;;  %s5171_s12 = inlined_call_operand.hbm [shape: f32[32,128], index: 12, kind: output, shape index: {1}]   ;;  %s5172_s13 = inlined_call_operand.vmem [shape: f32[48,128], index: 13, kind: output, shape index: {2}]  }
   0x1   :  { %5173 = sst [smem:[#allocation8_spill]] %s5159_s0 }
   0x2   :  { %19 = vsyncpa [#allocation3], 0 }
   0x3   :  { %20 = vsyncpa [#allocation5], 0  ;;  %s4544_s25 = smov 0  }
   0x4 LB: > { %s4550_s26 = sadd.s32 4294967295, %s4466_s25   ;;  %p3234_p0 = scmp.ge.s32.totalorder %s4466_s25, 1  ;;  %s4466_s25 = sphi %s4544_s25, %s26_s25  }
   0x5   : > { %p407_p1 = scmp.lt.s32.totalorder %s4466_s25, 3 }
   0x7   : > { %p408_p2 = pnand %p3234_p0, %p407_p1 }
   0x8   : > { %p459_p3 = scmp.lt.s32.totalorder (!%p408_p2), %s4550_s26, 1  ;;  %p3239_p4 = scmp.ne.s32.totalorder (!%p408_p2), %s4550_s26, 0 }
   0x9   : > { %411 = sbr.rel (%p408_p2) target bundleno = 3958 (0xf76), region = 64 }
  0x10   : > { %s460_s27 = scalar_select %p459_p3, %s4550_s26, 1 }
  0x11   : > { %481 = sbr.rel (%p3239_p4) target bundleno = 25 (0x19), region = 68  ;;  %s5174_s0 = sld [smem:[#allocation8_spill]] (!%p3239_p4)  ;;  %v486_v2 = vld [vmem:[%s5160_s1] sm:$0xff] (!%p3239_p4)  ;;  %v487_v3 = vld [vmem:[%s5160_s1 + $0x8] sm:$0xff] (!%p3239_p4)  ;;  %v488_v4 = vld [vmem:[%s5160_s1 + $0x10] sm:$0xff] (!%p3239_p4) }
  0x12   : > { %s4150_s28 = smul.u32 448, %s460_s27  ;;  %s3236_s29 = sshll.u32 %s460_s27, 3  ;;  %490 = vst [vmem:[#allocation4] sm:$0xff] (!%p3239_p4), %v486_v2  ;;  %v489_v5 = vld [vmem:[%s5160_s1 + $0x18] sm:$0xff] (!%p3239_p4)  ;;  %491 = vst [vmem:[#allocation4 + $0x8] sm:$0xff] (!%p3239_p4), %v487_v3  ;;  %v494_v6 = vld [vmem:[%s5161_s2] sm:$0xff] (!%p3239_p4) }
  0x13   : > { %s4559_s15 = scalar_lea.vmem %s5167_s8, %s3236_s29  ;;  %s4564_s18 = scalar_lea.vmem %s5169_s10, %s3236_s29  ;;  %492 = vst [vmem:[#allocation4 + $0x10] sm:$0xff] (!%p3239_p4), %v488_v4  ;;  %493 = vst [vmem:[#allocation4 + $0x18] sm:$0xff] (!%p3239_p4), %v489_v5  ;;  %v495_v7 = vld [vmem:[%s5161_s2 + $0x8] sm:$0xff] (!%p3239_p4)  ;;  %v496_v8 = vld [vmem:[%s5161_s2 + $0x10] sm:$0xff] (!%p3239_p4) }
  0x14   : > { %s4569_s21 = scalar_lea.vmem %s5166_s7, %s4150_s28  ;;  %s4574_s24 = scalar_lea.vmem %s5168_s9, %s4150_s28  ;;  %500 = vst [vmem:[%s5172_s13] sm:$0xff] (!%p3239_p4), %v494_v6  ;;  %501 = vst [vmem:[%s5172_s13 + $0x8] sm:$0xff] (!%p3239_p4), %v495_v7  ;;  %v497_v9 = vld [vmem:[%s5161_s2 + $0x18] sm:$0xff] (!%p3239_p4)  ;;  %v498_v10 = vld [vmem:[%s5161_s2 + $0x20] sm:$0xff] (!%p3239_p4) }
  0x15   : > { %502 = vst [vmem:[%s5172_s13 + $0x10] sm:$0xff] (!%p3239_p4), %v496_v8  ;;  %v499_v11 = vld [vmem:[%s5161_s2 + $0x28] sm:$0xff] (!%p3239_p4)  ;;  %503 = vst [vmem:[%s5172_s13 + $0x18] sm:$0xff] (!%p3239_p4), %v497_v9 }
  0x16   : > { %504 = vst [vmem:[%s5172_s13 + $0x20] sm:$0xff] (!%p3239_p4), %v498_v10  ;;  %505 = vst [vmem:[%s5172_s13 + $0x28] sm:$0xff] (!%p3239_p4), %v499_v11 }
  0x17   : > { %v482_v0 = vld [vmem:[%s5174_s0] sm:$0xff] (!%p3239_p4)  ;;  %v483_v1 = vld [vmem:[%s5174_s0 + $0x8] sm:$0xff] (!%p3239_p4) }
  0x18   : > { %484 = vst [vmem:[#allocation2] sm:$0xff] %v482_v0  ;;  %485 = vst [vmem:[#allocation2 + $0x8] sm:$0xff] %v483_v1 }
  0x19 PF: > { %v4178_v12 = vld [vmem:[%s4569_s21 + $0x40] sm:$0xff]   ;;  %v4179_v13 = vld [vmem:[%s4569_s21 + $0x48] sm:$0xff]   ;;  %v4181_v15 = vld [vmem:[%s4569_s21 + $0x50] sm:$0xff]   ;;  %v4468_v35 = vmov 0.0   ;;  %vm4469_vm0 = vmmov 0   ;;  %vm879_vm1 = vcmask 261120  }
  0x1a   : > { %3800 = vmatprep.subr.bf16.mxu1 %v4178_v12  ;;  %v4180_v14 = vld [vmem:[%s4569_s21] sm:$0xff]   ;;  %v4182_v16 = vld [vmem:[%s4569_s21 + $0x8] sm:$0xff]   ;;  %v4184_v17 = vld [vmem:[%s4569_s21 + $0x10] sm:$0xff]   ;;  %vm1442_vm2 = vcmask 392192   ;;  %vm2253_vm3 = vcmask 130048   ;;  %p4159_p5 = scmp.eq.s32.totalorder %s4550_s26, 1 }
  0x1b   : > { %3801 = vmatpush3.bf16.msra.mxu1 %v4178_v12  ;;  %3780 = vmatprep.subr.bf16.mxu0 %v4180_v14  ;;  %v4183_v18 = vld [vmem:[%s4569_s21 + $0x58] sm:$0xff]   ;;  %v4185_v20 = vld [vmem:[%s4569_s21 + $0x60] sm:$0xff]   ;;  %v506_v22 = vld [vmem:[#allocation4] sm:$0xff] }
  0x1c   : > { %3802 = vmatprep.subr.bf16.mxu1 %v4179_v13  ;;  %3781 = vmatpush3.bf16.msra.mxu0 %v4180_v14  ;;  %v4186_v19 = vld [vmem:[%s4569_s21 + $0x18] sm:$0xff]   ;;  %v4188_v21 = vld [vmem:[%s4569_s21 + $0x20] sm:$0xff]   ;;  %v4187_v25 = vld [vmem:[%s4569_s21 + $0x68] sm:$0xff]  }
  0x1d   : > { %3782 = vmatprep.subr.bf16.mxu0 %v4182_v16  ;;  %v507_v23 = vld [vmem:[#allocation4 + $0x8] sm:$0xff]  ;;  %v4190_v26 = vld [vmem:[%s4569_s21 + $0x28] sm:$0xff]   ;;  %v4189_v27 = vld [vmem:[%s4569_s21 + $0x70] sm:$0xff]  }
  0x1e   : > { %v4641_v24 = vpack.c.bf16 %v507_v23, %v506_v22  ;;  %v4192_v28 = vld [vmem:[%s4569_s21 + $0x30] sm:$0xff]   ;;  %v4191_v29 = vld [vmem:[%s4569_s21 + $0x78] sm:$0xff]   ;;  %v508_v31 = vld [vmem:[#allocation4 + $0x10] sm:$0xff] }
  0x1f   : > { %3803 = vmatpush3.bf16.msra.mxu1 %v4179_v13  ;;  %v4193_v30 = vld [vmem:[%s4569_s21 + $0x38] sm:$0xff]   ;;  %v509_v32 = vld [vmem:[#allocation4 + $0x18] sm:$0xff]  ;;  %v4194_v34 = vld [vmem:[%s4569_s21 + $0x80] sm:$0xff]  }
  0x20   : > { %3804 = vmatprep.subr.bf16.mxu1 %v4181_v15  ;;  %3783 = vmatpush3.bf16.msra.mxu0 %v4182_v16  ;;  %v4651_v33 = vpack.c.bf16 %v509_v32, %v508_v31  ;;  %v4195_v36 = vld [vmem:[%s4569_s21 + $0x88] sm:$0xff]   ;;  %v4197_v37 = vld [vmem:[%s4569_s21 + $0x90] sm:$0xff]   ;;  %v4198_v38 = vld [vmem:[%s4569_s21 + $0x98] sm:$0xff]  }
  0x21   : > { %3784 = vmatprep.subr.bf16.mxu0 %v4184_v17  ;;  %3816 = vmatprep.mubr.bf16.mxu1 %v4641_v24  ;;  %v4200_v39 = vld [vmem:[%s4569_s21 + $0xa0] sm:$0xff]   ;;  %v4201_v40 = vld [vmem:[%s4569_s21 + $0xa8] sm:$0xff]   ;;  %v4203_v41 = vld [vmem:[%s4569_s21 + $0xb0] sm:$0xff]  }
  0x22   : > { %3796 = vmatprep.mubr.bf16.mxu0 %v4641_v24  ;;  %v4204_v42 = vld [vmem:[%s4569_s21 + $0xb8] sm:$0xff]   ;;  %v4679_v43 = vld [vmem:[%s5172_s13] sm:$0xff]  ;;  %v4684_v44 = vld [vmem:[%s5172_s13 + $0x8] sm:$0xff] }
  0x23   : > { %3805 = vmatpush3.bf16.msra.mxu1 %v4181_v15  ;;  %v663_v45 = vpack.c.bf16 %v4684_v44, %v4679_v43  ;;  %v4693_v46 = vld [vmem:[%s5172_s13 + $0x10] sm:$0xff]  ;;  %v4698_v47 = vld [vmem:[%s5172_s13 + $0x18] sm:$0xff]  ;;  %v4707_v49 = vld [vmem:[%s5172_s13 + $0x20] sm:$0xff] }
  0x24   : > { %3806 = vmatprep.subr.bf16.mxu1 %v4183_v18  ;;  %3785 = vmatpush3.bf16.msra.mxu0 %v4184_v17  ;;  %v664_v48 = vpack.c.bf16 %v4698_v47, %v4693_v46  ;;  %v4712_v50 = vld [vmem:[%s5172_s13 + $0x28] sm:$0xff]  ;;  %v4196_v0 = vld [vmem:[%s5162_s3] sm:$0xff]   ;;  %v4202_v2 = vld [vmem:[%s5162_s3 + $0x10] sm:$0xff]  }
  0x25   : > { %3786 = vmatprep.subr.bf16.mxu0 %v4186_v19  ;;  %v665_v51 = vpack.c.bf16 %v4712_v50, %v4707_v49  ;;  %v4199_v1 = vld [vmem:[%s5162_s3 + $0x8] sm:$0xff]   ;;  %v4741_v3 = vld [vmem:[%s5163_s4] sm:$0xff]   ;;  %v4759_v5 = vld [vmem:[%s5163_s4 + $0x10] sm:$0xff]  }
  0x26   : > { %v4750_v4 = vld [vmem:[%s5163_s4 + $0x8] sm:$0xff]   ;;  %v4208_v10 = vld [vmem:[%s4569_s21 + $0xc0] sm:$0xff]   ;;  %v4210_v16 = vld [vmem:[%s4569_s21 + $0xd0] sm:$0xff]  }
  0x27   : > { %3807 = vmatpush3.bf16.msra.mxu1 %v4183_v18  ;;  %v4209_v15 = vld [vmem:[%s4569_s21 + $0xc8] sm:$0xff]   ;;  %v4212_v22 = vld [vmem:[%s4569_s21 + $0xe0] sm:$0xff]  }
  0x28   : > { %3808 = vmatprep.subr.bf16.mxu1 %v4185_v20  ;;  %3787 = vmatpush3.bf16.msra.mxu0 %v4186_v19  ;;  %v4213_v23 = vld [vmem:[%s4569_s21 + $0xe8] sm:$0xff]  }
  0x29   : > { %3788 = vmatprep.subr.bf16.mxu0 %v4188_v21 }
  0x2b   : > { %3809 = vmatpush3.bf16.msra.mxu1 %v4185_v20 }
  0x2c   : > { %3810 = vmatprep.subr.bf16.mxu1 %v4187_v25  ;;  %3789 = vmatpush3.bf16.msra.mxu0 %v4188_v21  ;;  %v4211_v21 = vld [vmem:[%s4569_s21 + $0xd8] sm:$0xff]  }
  0x2d   : > { %3790 = vmatprep.subr.bf16.mxu0 %v4190_v26 }
  0x2f   : > { %3811 = vmatpush3.bf16.msra.mxu1 %v4187_v25  ;;  %v4214_v25 = vld [vmem:[%s4569_s21 + $0xf0] sm:$0xff]  }
  0x30   : > { %3812 = vmatprep.subr.bf16.mxu1 %v4189_v27  ;;  %3791 = vmatpush3.bf16.msra.mxu0 %v4190_v26  ;;  %v4215_v26 = vld [vmem:[%s4569_s21 + $0xf8] sm:$0xff]  }
  0x31   : > { %3792 = vmatprep.subr.bf16.mxu0 %v4192_v28 }
  0x33   : > { %3813 = vmatpush3.bf16.msra.mxu1 %v4189_v27 }
  0x34   : > { %3814 = vmatprep.subr.bf16.mxu1 %v4191_v29  ;;  %3793 = vmatpush3.bf16.msra.mxu0 %v4192_v28 }
  0x35   : > { %3794 = vmatprep.subr.bf16.mxu0 %v4193_v30 }
  0x37   : > { %3815 = vmatpush3.bf16.msra.mxu1 %v4191_v29 }
  0x38   : > { %3795 = vmatpush3.bf16.msra.mxu0 %v4193_v30  ;;  %3820 = vmatprep.subr.bf16.mxu1 %v4468_v35 }
  0x39   : > { %3852 = vmatprep.subr.bf16.mxu0 %v4468_v35 }
  0x3a   : > { %3817 = vmatmul.mubr.bf16.vlgmr.msra.gmra.mrb[0].mxu1 %v4651_v33 }
  0x3b   : > { %3797 = vmatmul.mubr.bf16.vlgmr.msra.gmra.mrb[0].mxu0 %v4651_v33  ;;  %3824 = vmatprep.mubr.msk.bf16.mxu1 %vm4469_vm0, %v4468_v35 }
  0x3c   : > { %3853 = vmatpush3.bf16.msra.mxu0 %v4194_v34  ;;  %3868 = vmatprep.mubr.msk.bf16.mxu0 %vm4469_vm0, %v4468_v35 }
  0x3d   : > { %3854 = vmatprep.subr.bf16.mxu0 %v4468_v35 }
  0x40   : > { %3855 = vmatpush3.bf16.msra.mxu0 %v4195_v36 }
  0x41   : > { %3856 = vmatprep.subr.bf16.mxu0 %v4468_v35 }
  0x44   : > { %3857 = vmatpush3.bf16.msra.mxu0 %v4197_v37 }
  0x45   : > { %3858 = vmatprep.subr.bf16.mxu0 %v4468_v35 }
  0x48   : > { %3859 = vmatpush3.bf16.msra.mxu0 %v4198_v38 }
  0x49   : > { %3860 = vmatprep.subr.bf16.mxu0 %v4468_v35 }
  0x4c   : > { %3861 = vmatpush3.bf16.msra.mxu0 %v4200_v39 }
  0x4d   : > { %3862 = vmatprep.subr.bf16.mxu0 %v4468_v35 }
  0x50   : > { %3863 = vmatpush3.bf16.msra.mxu0 %v4201_v40 }
  0x51   : > { %3864 = vmatprep.subr.bf16.mxu0 %v4468_v35 }
  0x54   : > { %3865 = vmatpush3.bf16.msra.mxu0 %v4203_v41 }
  0x55   : > { %3866 = vmatprep.subr.bf16.mxu0 %v4468_v35 }
  0x58   : > { %3867 = vmatpush3.bf16.msra.mxu0 %v4204_v42 }
  0x5b   : > { %3869 = vmatmul.mubr.bf16.vlgmr.msra.gmra.mrb[4].mxu0 %v663_v45 }
  0x5c   : > { %3872 = vmatprep.mubr.msk.bf16.mxu0 %vm4469_vm0, %v4468_v35 }
  0x63   : > { %3873 = vmatmul.mubr.bf16.gmra.mrb[8].mxu0 %v664_v48  ;;  %v3379_v48 = vld [vmem:[%s4559_s15] ss:$0 sm:$0xff] }
  0x64   : > { %3876 = vmatprep.mubr.msk.bf16.mxu0 %vm4469_vm0, %v4468_v35 }
  0x6b   : > { %3877 = vmatmul.mubr.bf16.gmra.mrb[12].mxu0 %v665_v51 }
 0x10d   : > { %v3818_v52 = vpop.f32.mrb[0].mxu1 }
 0x10e   : > { %v847_v53 = vpop.f32.mrb[1].mxu1  ;;  %v3798_v55 = vpop.f32.mrb[0].mxu0 }
 0x10f   : > { %v3819_v54 = vpop.f32.mrb[2].mxu1  ;;  %v748_v58 = vpop.f32.mrb[1].mxu0 }
 0x110   : > { %v863_v56 = vpack.c.bf16 %v3819_v54, %v3818_v52  ;;  %v850_v57 = vpop.f32.mrb[3].mxu1  ;;  %v3799_v60 = vpop.f32.mrb[2].mxu0 }
 0x111   : > { %v862_v59 = vpack.c.bf16 %v850_v57, %v847_v53  ;;  %v764_v61 = vpack.c.bf16 %v3799_v60, %v3798_v55  ;;  %v751_v62 = vpop.f32.mrb[3].mxu0 }
 0x112   : > { %v763_v63 = vpack.c.bf16 %v751_v62, %v748_v58 }
 0x113   : > { %3821 = vmatpush3.bf16.msra.mxu1 %v862_v59 }
 0x114   : > { %3822 = vmatprep.subr.bf16.mxu1 %v4468_v35 }
 0x117   : > { %3823 = vmatpush3.bf16.msra.mxu1 %v863_v56 }
 0x118   : > { %3836 = vmatprep.subr.bf16.mxu1 %v4468_v35 }
 0x11a   : > { %3825 = vmatmul.mubr.msk.bf16.vlgmr.msra.gmra.mrb[4].mxu1 %vm879_vm1, %v4196_v0 }
 0x11b   : > { %3837 = vmatpush3.bf16.msra.mxu1 %v763_v63  ;;  %3828 = vmatprep.mubr.msk.bf16.mxu1 %vm4469_vm0, %v4468_v35 }
 0x11c   : > { %3838 = vmatprep.subr.bf16.mxu1 %v4468_v35 }
 0x11f   : > { %3839 = vmatpush3.bf16.msra.mxu1 %v764_v61 }
 0x120   : > { %3880 = vmatprep.subr.bf16.mxu1 %v4468_v35 }
 0x122   : > { %3829 = vmatmul.mubr.msk.bf16.gmra.mrb[8].mxu1 %vm879_vm1, %v4199_v1 }
 0x123   : > { %3832 = vmatprep.mubr.msk.bf16.mxu1 %vm4469_vm0, %v4468_v35 }
 0x12a   : > { %3833 = vmatmul.mubr.msk.bf16.gmra.mrb[12].mxu1 %vm879_vm1, %v4202_v2 }
 0x12b   : > { %3840 = vmatprep.mubr.msk.bf16.mxu1 %vm4469_vm0, %v4468_v35 }
 0x12e   : > { %v1109_v6 = vpop.f32.mrb[4].mxu0 }
 0x12f   : > { %v3870_v7 = vpop.f32.mrb[5].mxu0 }
 0x130   : > { %v1112_v8 = vpop.f32.mrb[6].mxu0 }
 0x131   : > { %v3871_v9 = vpop.f32.mrb[7].mxu0 }
 0x132   : > { %3841 = vmatmul.mubr.msk.bf16.vlgmr.msra.gmra.mrb[16].mxu1 %vm879_vm1, %v4741_v3 }
 0x133   : > { %3844 = vmatprep.mubr.msk.bf16.mxu1 %vm4469_vm0, %v4468_v35  ;;  %3881 = vmatpush3.bf16.msra.mxu1 %v4208_v10 }
 0x134   : > { %3882 = vmatprep.subr.bf16.mxu1 %v4468_v35 }
 0x136   : > { %v1117_v11 = vpop.f32.mrb[8].mxu0 }
 0x137   : > { %v3874_v12 = vpop.f32.mrb[9].mxu0  ;;  %3883 = vmatpush3.bf16.msra.mxu1 %v4209_v15 }
 0x138   : > { %v1120_v13 = vpop.f32.mrb[10].mxu0  ;;  %3884 = vmatprep.subr.bf16.mxu1 %v4468_v35 }
 0x139   : > { %v3875_v14 = vpop.f32.mrb[11].mxu0 }
 0x13a   : > { %3845 = vmatmul.mubr.msk.bf16.gmra.mrb[20].mxu1 %vm879_vm1, %v4750_v4 }
 0x13b   : > { %3848 = vmatprep.mubr.msk.bf16.mxu1 %vm4469_vm0, %v4468_v35  ;;  %3885 = vmatpush3.bf16.msra.mxu1 %v4210_v16 }
 0x13c   : > { %3886 = vmatprep.subr.bf16.mxu1 %v4468_v35 }
 0x13e   : > { %v4770_v17 = vpop.f32.mrb[12].mxu0 }
 0x13f   : > { %v3878_v18 = vpop.f32.mrb[13].mxu0  ;;  %3887 = vmatpush3.bf16.msra.mxu1 %v4211_v21 }
 0x140   : > { %v4772_v19 = vpop.f32.mrb[14].mxu0  ;;  %3888 = vmatprep.subr.bf16.mxu1 %v4468_v35 }
 0x141   : > { %v3879_v20 = vpop.f32.mrb[15].mxu0 }
 0x142   : > { %3849 = vmatmul.mubr.msk.bf16.gmra.mrb[24].mxu1 %vm879_vm1, %v4759_v5 }
 0x143   : > { %3896 = vmatprep.mubr.msk.bf16.mxu1 %vm4469_vm0, %v4468_v35  ;;  %3889 = vmatpush3.bf16.msra.mxu1 %v4212_v22 }
 0x144   : > { %3890 = vmatprep.subr.bf16.mxu1 %v4468_v35 }
 0x147   : > { %3891 = vmatpush3.bf16.msra.mxu1 %v4213_v23 }
 0x148   : > { %3892 = vmatprep.subr.bf16.mxu1 %v4468_v35 }
 0x14b   : > { %3893 = vmatpush3.bf16.msra.mxu1 %v4214_v25 }
 0x14c   : > { %3894 = vmatprep.subr.bf16.mxu1 %v4468_v35 }
 0x14f   : > { %3895 = vmatpush3.bf16.msra.mxu1 %v4215_v26 }
 0x1ed   : > { %v923_v27 = vpop.f32.mrb[4].mxu1 }
 0x1ee   : > { %v3826_v28 = vpop.f32.mrb[5].mxu1 }
 0x1ef   : > { %v926_v29 = vpop.f32.mrb[6].mxu1 }
 0x1f0   : > { %v3827_v30 = vpop.f32.mrb[7].mxu1 }
 0x1f5   : > { %v931_v31 = vpop.f32.mrb[8].mxu1 }
 0x1f6   : > { %v3830_v32 = vpop.f32.mrb[9].mxu1 }
 0x1f7   : > { %v934_v34 = vpop.f32.mrb[10].mxu1 }
 0x1f8   : > { %v3831_v36 = vpop.f32.mrb[11].mxu1 }
 0x1fd   : > { %v939_v37 = vpop.f32.mrb[12].mxu1 }
 0x1fe   : > { %v3834_v38 = vpop.f32.mrb[13].mxu1 }
 0x1ff   : > { %v942_v39 = vpop.f32.mrb[14].mxu1 }
 0x200   : > { %v3835_v40 = vpop.f32.mrb[15].mxu1 }
 0x205   : > { %v1004_v41 = vpop.f32.mrb[16].mxu1 }
 0x206   : > { %v1005_v42 = vadd.f32 %v1004_v41, %v923_v27  ;;  %v3842_v45 = vpop.f32.mrb[17].mxu1 }
 0x207   : > { %v1007_v51 = vpop.f32.mrb[18].mxu1 }
 0x208   : > { %v1132_v52 = vadd.f32 %v1109_v6, %v1005_v42  ;;  %v1008_v53 = vadd.f32 %v1007_v51, %v926_v29  ;;  %v3843_v54 = vpop.f32.mrb[19].mxu1 }
 0x20a   : > { %v1144_v55 = vadd.f32 %v3379_v48, %v1132_v52  ;;  %v1133_v56 = vadd.f32 %v1112_v8, %v1008_v53 }
 0x20c   : > { %v3380_v57 = vmul.f32 -1.442695, %v1144_v55  ;;  %v1145_v58 = vadd.f32 %v3379_v48, %v1133_v56 }
 0x20d   : > { %v1012_v59 = vpop.f32.mrb[20].mxu1 }
 0x20e   : > { %4300 = vpow2.f32 %v3380_v57  ;;  %v3381_v60 = vmul.f32 -1.442695, %v1145_v58  ;;  %v1013_v61 = vadd.f32 %v1012_v59, %v931_v31  ;;  %v3846_v62 = vpop.f32.mrb[21].mxu1  ;;  %v3386_v59 = vld [vmem:[%s4559_s15 + $0x1] ss:$0 sm:$0xff] }
 0x20f   : > { %v1015_v63 = vpop.f32.mrb[22].mxu1 }
 0x210   : > { %4302 = vpow2.f32 %v3381_v60  ;;  %v1134_v0 = vadd.f32 %v1117_v11, %v1013_v61  ;;  %v1016_v1 = vadd.f32 %v1015_v63, %v934_v34  ;;  %v3847_v2 = vpop.f32.mrb[23].mxu1 }
 0x212   : > { %v1146_v7 = vadd.f32 %v3379_v48, %v1134_v0  ;;  %v1135_v9 = vadd.f32 %v1120_v13, %v1016_v1 }
 0x214   : > { %v3382_v10 = vmul.f32 -1.442695, %v1146_v7  ;;  %v1147_v6 = vadd.f32 %v3379_v48, %v1135_v9 }
 0x215   : > { %v1020_v12 = vpop.f32.mrb[24].mxu1 }
 0x216   : > { %4304 = vpow2.f32 %v3382_v10  ;;  %v3383_v14 = vmul.f32 -1.442695, %v1147_v6  ;;  %v1021_v8 = vadd.f32 %v1020_v12, %v939_v37  ;;  %v3850_v15 = vpop.f32.mrb[25].mxu1 }
 0x217   : > { %v1023_v16 = vpop.f32.mrb[26].mxu1 }
 0x218   : > { %v4301_v18 = vpop.eup %4300  ;;  %4306 = vpow2.f32 %v3383_v14  ;;  %v1136_v20 = vadd.f32 %v4770_v17, %v1021_v8  ;;  %v1024_v21 = vadd.f32 %v1023_v16, %v942_v39  ;;  %v3851_v22 = vpop.f32.mrb[27].mxu1 }
 0x219   : > { %v1168_v23 = vadd.f32 1.0, %v4301_v18 }
 0x21a   : > { %v4303_v11 = vpop.eup %4302  ;;  %v1148_v25 = vadd.f32 %v3379_v48, %v1136_v20  ;;  %v1137_v26 = vadd.f32 %v4772_v19, %v1024_v21 }
 0x21b   : > { %4308 = vrcp.f32 %v1168_v23  ;;  %v1169_v13 = vadd.f32 1.0, %v4303_v11 }
 0x21c   : > { %v3384_v27 = vmul.f32 -1.442695, %v1148_v25  ;;  %v1149_v28 = vadd.f32 %v3379_v48, %v1137_v26 }
 0x21d   : > { %4310 = vrcp.f32 %v1169_v13 }
 0x21e   : > { %4312 = vpow2.f32 %v3384_v27  ;;  %v3385_v29 = vmul.f32 -1.442695, %v1149_v28 }
 0x220   : > { %v4305_v30 = vpop.eup %4304  ;;  %4314 = vpow2.f32 %v3385_v29 }
 0x221   : > { %v1170_v31 = vadd.f32 1.0, %v4305_v30 }
 0x222   : > { %v4307_v32 = vpop.eup %4306 }
 0x223   : > { %4316 = vrcp.f32 %v1170_v31  ;;  %v1171_v17 = vadd.f32 1.0, %v4307_v32 }
 0x225   : > { %v4309_v34 = vpop.eup %4308  ;;  %4318 = vrcp.f32 %v1171_v17 }
 0x226   : > { %v1186_v38 = vmul.f32 %v4309_v34, %v1144_v55 }
 0x227   : > { %v4311_v36 = vpop.eup %4310 }
 0x228   : > { %v4313_v37 = vpop.eup %4312  ;;  %v1187_v39 = vmul.f32 %v4311_v36, %v1145_v58 }
 0x229   : > { %v1172_v19 = vadd.f32 1.0, %v4313_v37 }
 0x22a   : > { %v4315_v40 = vpop.eup %4314  ;;  %v1192_v41 = vpack.c.bf16 %v1187_v39, %v1186_v38 }
 0x22b   : > { %4320 = vrcp.f32 %v1172_v19  ;;  %v1173_v42 = vadd.f32 1.0, %v4315_v40 }
 0x22c   : > { %3897 = vmatmul.mubr.bf16.vlgmr.msra.gmra.mrb[28].mxu1 %v1192_v41 }
 0x22d   : > { %v4317_v45 = vpop.eup %4316  ;;  %4322 = vrcp.f32 %v1173_v42  ;;  %3900 = vmatprep.mubr.msk.bf16.mxu1 %vm4469_vm0, %v4468_v35 }
 0x22e   : > { %v1188_v51 = vmul.f32 %v4317_v45, %v1146_v7 }
 0x22f   : > { %v4319_v48 = vpop.eup %4318 }
 0x230   : > { %v1189_v52 = vmul.f32 %v4319_v48, %v1147_v6  ;;  %v4216_v48 = vld [vmem:[%s4569_s21 + $0x140] sm:$0xff]  }
 0x231   : > { %3918 = vmatprep.subr.bf16.mxu1 %v4216_v48 }
 0x232   : > { %v1193_v53 = vpack.c.bf16 %v1189_v52, %v1188_v51  ;;  %v4217_v51 = vld [vmem:[%s4569_s21 + $0x148] sm:$0xff]   ;;  %3919 = vmatpush3.bf16.msra.mxu1 %v4216_v48  ;;  %v4218_v52 = vld [vmem:[%s4569_s21 + $0x150] sm:$0xff]  }
 0x233   : > { %3920 = vmatprep.subr.bf16.mxu1 %v4217_v51 }
 0x234   : > { %3901 = vmatmul.mubr.bf16.gmra.mrb[32].mxu1 %v1193_v53  ;;  %v4219_v53 = vld [vmem:[%s4569_s21 + $0x158] sm:$0xff]  }
 0x235   : > { %v4321_v54 = vpop.eup %4320  ;;  %3904 = vmatprep.mubr.msk.bf16.mxu1 %vm4469_vm0, %v4468_v35 }
 0x236   : > { %v1190_v56 = vmul.f32 %v4321_v54, %v1148_v25  ;;  %3921 = vmatpush3.bf16.msra.mxu1 %v4217_v51  ;;  %v4220_v54 = vld [vmem:[%s4569_s21 + $0x160] sm:$0xff]  }
 0x237   : > { %v4323_v55 = vpop.eup %4322  ;;  %3922 = vmatprep.subr.bf16.mxu1 %v4218_v52 }
 0x238   : > { %v1191_v57 = vmul.f32 %v4323_v55, %v1149_v28  ;;  %v4222_v55 = vld [vmem:[%s4569_s21 + $0x170] sm:$0xff]  }
 0x23a   : > { %v1194_v58 = vpack.c.bf16 %v1191_v57, %v1190_v56  ;;  %3923 = vmatpush3.bf16.msra.mxu1 %v4218_v52 }
 0x23b   : > { %3924 = vmatprep.subr.bf16.mxu1 %v4219_v53 }
 0x23c   : > { %3905 = vmatmul.mubr.bf16.gmra.mrb[36].mxu1 %v1194_v58 }
 0x23e   : > { %3925 = vmatpush3.bf16.msra.mxu1 %v4219_v53 }
 0x23f   : > { %3926 = vmatprep.subr.bf16.mxu1 %v4220_v54 }
 0x242   : > { %3927 = vmatpush3.bf16.msra.mxu1 %v4220_v54 }
 0x2ff   : > { %v1283_v60 = vpop.f32.mrb[28].mxu1 }
 0x300   : > { %v1284_v61 = vadd.f32 %v3386_v59, %v1283_v60  ;;  %v3898_v62 = vpop.f32.mrb[29].mxu1 }
 0x301   : > { %v1286_v63 = vpop.f32.mrb[30].mxu1 }
 0x302   : > { %1306 = vadd.xlane.f32.xlu0 %v1284_v61  ;;  %v3899_v0 = vpop.f32.mrb[31].mxu1  ;;  %v1287_v1 = vadd.f32 %v3386_v59, %v1286_v63 }
 0x306   : > { %1308 = vadd.xlane.f32.xlu0 %v1287_v1 }
 0x307   : > { %v1291_v2 = vpop.f32.mrb[32].mxu1 }
 0x308   : > { %v1292_v7 = vadd.f32 %v3386_v59, %v1291_v2  ;;  %v3902_v9 = vpop.f32.mrb[33].mxu1 }
 0x309   : > { %v1294_v10 = vpop.f32.mrb[34].mxu1 }
 0x30a   : > { %1310 = vadd.xlane.f32.xlu1 %v1292_v7  ;;  %v3903_v6 = vpop.f32.mrb[35].mxu1  ;;  %v1295_v12 = vadd.f32 %v3386_v59, %v1294_v10 }
 0x30e   : > { %1312 = vadd.xlane.f32.xlu1 %v1295_v12 }
 0x30f   : > { %v1299_v14 = vpop.f32.mrb[36].mxu1 }
 0x310   : > { %v1300_v8 = vadd.f32 %v3386_v59, %v1299_v14  ;;  %v3906_v15 = vpop.f32.mrb[37].mxu1 }
 0x311   : > { %v1302_v16 = vpop.f32.mrb[38].mxu1 }
 0x312   : > { %v1303_v18 = vadd.f32 %v3386_v59, %v1302_v16  ;;  %1314 = vadd.xlane.f32.xlu0 %v1300_v8  ;;  %v3907_v20 = vpop.f32.mrb[39].mxu1 }
 0x314   : > { %1316 = vadd.xlane.f32.xlu1 %v1303_v18 }
 0x38f   : > { %v1307_v21 = vpop.xlane.xlu0 %1306 }
 0x390   : > { %v1318_v22 = vmul.f32 0.03125, %v1307_v21 }
 0x392   : > { %v4792_v23 = vsub.f32 %v1284_v61, %v1318_v22 }
 0x393   : > { %v1309_v11 = vpop.xlane.xlu0 %1308 }
 0x394   : > { %v1319_v25 = vmul.f32 0.03125, %v1309_v11  ;;  %v1330_v26 = vmul.f32 %v4792_v23, %v4792_v23 }
 0x396   : > { %1336 = vadd.xlane.f32.xlu0 %v1330_v26  ;;  %v4796_v13 = vsub.f32 %v1287_v1, %v1319_v25  ;;  %v1349_v57 = vmul.f32 96.0, %v1319_v25 }
 0x397   : > { %v1311_v27 = vpop.xlane.xlu1 %1310 }
 0x398   : > { %v1320_v28 = vmul.f32 0.03125, %v1311_v27  ;;  %v1331_v29 = vmul.f32 %v4796_v13, %v4796_v13  ;;  %v1355_v60 = vmul.f32 %v1349_v57, %v1319_v25 }
 0x39a   : > { %1338 = vadd.xlane.f32.xlu1 %v1331_v29  ;;  %v4800_v30 = vsub.f32 %v1292_v7, %v1320_v28  ;;  %v1350_v61 = vmul.f32 96.0, %v1320_v28  ;;  %v3395_v29 = vld [vmem:[%s4559_s15 + $0x2] ss:$0 sm:$0xff] }
 0x39b   : > { %v1313_v31 = vpop.xlane.xlu1 %1312 }
 0x39c   : > { %v1321_v32 = vmul.f32 0.03125, %v1313_v31  ;;  %v1332_v17 = vmul.f32 %v4800_v30, %v4800_v30  ;;  %v1356_v2 = vmul.f32 %v1350_v61, %v1320_v28 }
 0x39e   : > { %1340 = vadd.xlane.f32.xlu0 %v1332_v17  ;;  %v4804_v34 = vsub.f32 %v1295_v12, %v1321_v32  ;;  %v1351_v7 = vmul.f32 96.0, %v1321_v32 }
 0x39f   : > { %v1315_v36 = vpop.xlane.xlu0 %1314 }
 0x3a0   : > { %v4806_v37 = vmul.f32 0.03125, %v1315_v36  ;;  %v1333_v38 = vmul.f32 %v4804_v34, %v4804_v34  ;;  %v1357_v14 = vmul.f32 %v1351_v7, %v1321_v32 }
 0x3a1   : > { %v1317_v39 = vpop.xlane.xlu1 %1316 }
 0x3a2   : > { %v4810_v19 = vmul.f32 0.03125, %v1317_v39  ;;  %1342 = vadd.xlane.f32.xlu1 %v1333_v38  ;;  %v4813_v40 = vsub.f32 %v1300_v8, %v4806_v37  ;;  %v1352_v8 = vmul.f32 96.0, %v4806_v37  ;;  %v3396_v38 = vld [vmem:[%s4559_s15 + $0x3] ss:$0 sm:$0xff] }
 0x3a4   : > { %v1334_v41 = vmul.f32 %v4813_v40, %v4813_v40  ;;  %v4818_v42 = vsub.f32 %v1303_v18, %v4810_v19  ;;  %v1353_v20 = vmul.f32 96.0, %v4810_v19 }
 0x3a6   : > { %1344 = vadd.xlane.f32.xlu0 %v1334_v41  ;;  %v1335_v45 = vmul.f32 %v4818_v42, %v4818_v42  ;;  %v1359_v28 = vmul.f32 %v1353_v20, %v4810_v19  ;;  %v4228_v20 = vld [vmem:[%s4569_s21 + $0x120] sm:$0xff]  }
 0x3a8   : > { %1346 = vadd.xlane.f32.xlu1 %v1335_v45 }
 0x3d3   : > { %1426 = vxpose.xlu0.c.b16.start [1/3] (short) (narrow) %v4741_v3, 32  ;;  %v4221_v3 = vld [vmem:[%s4569_s21 + $0x168] sm:$0xff]  }
 0x3d4   : > { %3928 = vmatprep.subr.bf16.mxu1 %v4221_v3 }
 0x3d5   : > { %3929 = vmatpush3.bf16.msra.mxu1 %v4221_v3 }
 0x3d6   : > { %3930 = vmatprep.subr.bf16.mxu1 %v4222_v55 }
 0x3d7   : > { %1427 = vxpose.xlu0.c.b16.cont [2/3] (short) (narrow) %v4750_v4, 32  ;;  %v1348_v4 = vmul.f32 96.0, %v1318_v22 }
 0x3d9   : > { %3931 = vmatpush3.bf16.msra.mxu1 %v4222_v55  ;;  %v1354_v56 = vmul.f32 %v1348_v4, %v1318_v22  ;;  %v1358_v22 = vmul.f32 %v1352_v8, %v4806_v37 }
 0x3db   : > { %1428 = vxpose.xlu0.c.b16.end [3/3] (short) (narrow) %v4759_v5, 32 }
 0x423   : > { %v1337_v58 = vpop.xlane.xlu0 %1336 }
 0x424   : > { %v1360_v5 = vsub.f32 %v1337_v58, %v1354_v56 }
 0x426   : > { %v1366_v59 = vmul.f32 0.03125, %v1360_v5 }
 0x427   : > { %v1339_v62 = vpop.xlane.xlu1 %1338 }
 0x428   : > { %v1372_v63 = vadd.f32 1e-05, %v1366_v59  ;;  %v1361_v0 = vsub.f32 %v1339_v62, %v1355_v60 }
 0x42a   : > { %4324 = vrsqrt.f32 %v1372_v63  ;;  %v1367_v1 = vmul.f32 0.03125, %v1361_v0 }
 0x42b   : > { %v1341_v9 = vpop.xlane.xlu0 %1340 }
 0x42c   : > { %v1373_v10 = vadd.f32 1e-05, %v1367_v1  ;;  %v1362_v6 = vsub.f32 %v1341_v9, %v1356_v2  ;;  %v4223_v9 = vld [vmem:[%s4569_s21 + $0x178] sm:$0xff]  }
 0x42d   : > { %3932 = vmatprep.subr.bf16.mxu1 %v4223_v9 }
 0x42e   : > { %4326 = vrsqrt.f32 %v1373_v10  ;;  %v1368_v12 = vmul.f32 0.03125, %v1362_v6  ;;  %3933 = vmatpush3.bf16.msra.mxu1 %v4223_v9  ;;  %v4250_v9 = vld [vmem:[%s4574_s24 + $0x20] sm:$0xff]  }
 0x42f   : > { %v1343_v15 = vpop.xlane.xlu1 %1342 }
 0x430   : > { %v1374_v16 = vadd.f32 1e-05, %v1368_v12  ;;  %v1363_v18 = vsub.f32 %v1343_v15, %v1357_v14  ;;  %v4225_v15 = vld [vmem:[%s4569_s21 + $0x108] sm:$0xff]  }
 0x432   : > { %4328 = vrsqrt.f32 %v1374_v16  ;;  %v1369_v21 = vmul.f32 0.03125, %v1363_v18  ;;  %v4226_v16 = vld [vmem:[%s4569_s21 + $0x110] sm:$0xff]   ;;  %v4227_v18 = vld [vmem:[%s4569_s21 + $0x118] sm:$0xff]  }
 0x433   : > { %v1345_v11 = vpop.xlane.xlu0 %1344 }
 0x434   : > { %v4325_v25 = vpop.eup %4324  ;;  %v1375_v26 = vadd.f32 1e-05, %v1369_v21  ;;  %v1364_v27 = vsub.f32 %v1345_v11, %v1358_v22  ;;  %v4229_v21 = vld [vmem:[%s4569_s21 + $0x128] sm:$0xff]   ;;  %v4230_v22 = vld [vmem:[%s4569_s21 + $0x130] sm:$0xff]   ;;  %v4232_v11 = vld [vmem:[%s4569_s21 + $0x180] sm:$0xff]  }
 0x435   : > { %v1347_v31 = vpop.xlane.xlu1 %1346  ;;  %v1384_v32 = vmul.f32 %v4325_v25, %v4792_v23  ;;  %v4233_v25 = vld [vmem:[%s4569_s21 + $0x188] sm:$0xff]  }
 0x436   : > { %4330 = vrsqrt.f32 %v1375_v26  ;;  %v1370_v17 = vmul.f32 0.03125, %v1364_v27  ;;  %v1365_v36 = vsub.f32 %v1347_v31, %v1359_v28  ;;  %v4234_v26 = vld [vmem:[%s4569_s21 + $0x190] sm:$0xff]   ;;  %v4235_v27 = vld [vmem:[%s4569_s21 + $0x198] sm:$0xff]   ;;  %v4237_v28 = vld [vmem:[%s4569_s21 + $0x1a8] sm:$0xff]  }
 0x437   : > { %v1396_v39 = vmul.f32 %v3395_v29, %v1384_v32  ;;  %v4239_v31 = vld [vmem:[%s4569_s21 + $0x1b8] sm:$0xff]   ;;  %v3415_v32 = vld [vmem:[%s4559_s15 + $0x4] ss:$0 sm:$0xff] }
 0x438   : > { %v4327_v41 = vpop.eup %4326  ;;  %v1376_v45 = vadd.f32 1e-05, %v1370_v17  ;;  %v1371_v48 = vmul.f32 0.03125, %v1365_v36 }
 0x439   : > { %v1385_v37 = vmul.f32 %v4327_v41, %v4796_v13  ;;  %v1408_v51 = vadd.f32 %v3396_v38, %v1396_v39  ;;  %v1434_v52 = vpop.trf.xlu0 }
 0x43a   : > { %4332 = vrsqrt.f32 %v1376_v45  ;;  %v1377_v53 = vadd.f32 1e-05, %v1371_v48  ;;  %3914 = vmatprep.mubr.msk.bf16.mxu0 %vm1442_vm2, %v1434_v52 }
 0x43b   : > { %v1397_v19 = vmul.f32 %v3395_v29, %v1385_v37  ;;  %v1414_v23 = vadd.f32 %v1408_v51, %v4679_v43 }
 0x43c   : > { %v4329_v54 = vpop.eup %4328  ;;  %4334 = vrsqrt.f32 %v1377_v53 }
 0x43d   : > { %v1409_v3 = vadd.f32 %v3396_v38, %v1397_v19  ;;  %3105 = vst [vmem:[%s5172_s13] sm:$0xff] %v1414_v23  ;;  %v1386_v55 = vmul.f32 %v4329_v54, %v4800_v30 }
 0x43f   : > { %v1415_v13 = vadd.f32 %v1409_v3, %v4684_v44  ;;  %v1398_v4 = vmul.f32 %v3395_v29, %v1386_v55 }
 0x440   : > { %v4331_v56 = vpop.eup %4330 }
 0x441   : > { %v1420_v57 = vpack.c.bf16 %v1415_v13, %v1414_v23  ;;  %3106 = vst [vmem:[%s5172_s13 + $0x8] sm:$0xff] %v1415_v13  ;;  %v1387_v43 = vmul.f32 %v4331_v56, %v4804_v34  ;;  %v1410_v58 = vadd.f32 %v3396_v38, %v1398_v4 }
 0x443   : > { %3908 = vmatprep.subr.bf16.mxu0 %v1420_v57  ;;  %v1399_v5 = vmul.f32 %v3395_v29, %v1387_v43  ;;  %v1416_v59 = vadd.f32 %v1410_v58, %v4693_v46 }
 0x444   : > { %v4333_v60 = vpop.eup %4332  ;;  %3909 = vmatpush3.bf16.msra.mxu0 %v1420_v57 }
 0x445   : > { %v1411_v61 = vadd.f32 %v3396_v38, %v1399_v5  ;;  %3107 = vst [vmem:[%s5172_s13 + $0x10] sm:$0xff] %v1416_v59  ;;  %v1388_v44 = vmul.f32 %v4333_v60, %v4813_v40 }
 0x446   : > { %v4335_v30 = vpop.eup %4334 }
 0x447   : > { %v1417_v62 = vadd.f32 %v1411_v61, %v4698_v47  ;;  %v1389_v63 = vmul.f32 %v4335_v30, %v4818_v42  ;;  %v1400_v34 = vmul.f32 %v3395_v29, %v1388_v44  ;;  %v1435_v42 = vpop.trf.xlu0 }
 0x449   : > { %v1421_v0 = vpack.c.bf16 %v1417_v62, %v1416_v59  ;;  %3108 = vst [vmem:[%s5172_s13 + $0x18] sm:$0xff] %v1417_v62  ;;  %v1401_v46 = vmul.f32 %v3395_v29, %v1389_v63  ;;  %v1412_v1 = vadd.f32 %v3396_v38, %v1400_v34  ;;  %v4238_v29 = vld [vmem:[%s4569_s21 + $0x1b0] sm:$0xff]   ;;  %v4240_v34 = vld [vmem:[%s4574_s24 + $0x40] sm:$0xff]  }
 0x44b   : > { %3910 = vmatprep.subr.bf16.mxu0 %v1421_v0  ;;  %v1413_v2 = vadd.f32 %v3396_v38, %v1401_v46  ;;  %v1418_v7 = vadd.f32 %v1412_v1, %v4707_v49  ;;  %v4224_v49 = vld [vmem:[%s4569_s21 + $0x100] sm:$0xff]   ;;  %v4241_v46 = vld [vmem:[%s4574_s24 + $0x48] sm:$0xff]  }
 0x44c   : > { %3911 = vmatpush3.bf16.msra.mxu0 %v1421_v0  ;;  %3938 = vmatprep.subr.bf16.mxu1 %v4224_v49  ;;  %v4242_v0 = vld [vmem:[%s4574_s24] sm:$0xff]   ;;  %v4244_v1 = vld [vmem:[%s4574_s24 + $0x8] sm:$0xff]  }
 0x44d   : > { %v1419_v40 = vadd.f32 %v1413_v2, %v4712_v50  ;;  %3109 = vst [vmem:[%s5172_s13 + $0x20] sm:$0xff] %v1418_v7  ;;  %v4243_v2 = vld [vmem:[%s4574_s24 + $0x50] sm:$0xff]  }
 0x44f   : > { %v1422_v47 = vpack.c.bf16 %v1419_v40, %v1418_v7  ;;  %3110 = vst [vmem:[%s5172_s13 + $0x28] sm:$0xff] %v1419_v40  ;;  %v4246_v7 = vld [vmem:[%s4574_s24 + $0x10] sm:$0xff]   ;;  %v4245_v40 = vld [vmem:[%s4574_s24 + $0x58] sm:$0xff]  }
 0x451   : > { %3912 = vmatprep.subr.bf16.mxu0 %v1422_v47 }
 0x452   : > { %3913 = vmatpush3.bf16.msra.mxu0 %v1422_v47  ;;  %v4248_v47 = vld [vmem:[%s4574_s24 + $0x18] sm:$0xff]  }
 0x453   : > { %3958 = vmatprep.subr.bf16.mxu0 %v4232_v11 }
 0x455   : > { %3915 = vmatmul.mubr.msk.bf16.vlgmr.msra.gmra.mrb[16].mxu0 %vm1442_vm2, %v1435_v42  ;;  %v4247_v42 = vld [vmem:[%s4574_s24 + $0x60] sm:$0xff]  }
 0x456   : > { %3959 = vmatpush3.bf16.msra.mxu0 %v4232_v11 }
 0x457   : > { %3960 = vmatprep.subr.bf16.mxu0 %v4233_v25 }
 0x45a   : > { %3961 = vmatpush3.bf16.msra.mxu0 %v4233_v25 }
 0x45b   : > { %3962 = vmatprep.subr.bf16.mxu0 %v4234_v26 }
 0x45e   : > { %3963 = vmatpush3.bf16.msra.mxu0 %v4234_v26 }
 0x45f   : > { %3964 = vmatprep.subr.bf16.mxu0 %v4235_v27 }
 0x462   : > { %3965 = vmatpush3.bf16.msra.mxu0 %v4235_v27 }
 0x528   : > { %v3916_v50 = vpop.f32.mrb[16].mxu0 }
 0x529   : > { %v1483_v10 = vpop.f32.mrb[17].mxu0 }
 0x52a   : > { %v3917_v6 = vpop.f32.mrb[18].mxu0 }
 0x52b   : > { %v1499_v12 = vpack.c.bf16 %v3917_v6, %v3916_v50  ;;  %v1486_v14 = vpop.f32.mrb[19].mxu0  ;;  %v4252_v50 = vld [vmem:[%s4574_s24 + $0x28] sm:$0xff]   ;;  %v4254_v6 = vld [vmem:[%s4574_s24 + $0x30] sm:$0xff]  }
 0x52c   : > { %v1498_v8 = vpack.c.bf16 %v1486_v14, %v1483_v10  ;;  %v4251_v10 = vld [vmem:[%s4574_s24 + $0x70] sm:$0xff]   ;;  %v4923_v14 = vld [vmem:[#allocation2] sm:$0xff] }
 0x52e   : > { %3934 = vmatprep.mubr.bf16.mxu1 %v1498_v8  ;;  %v4925_v8 = vld [vmem:[#allocation2 + $0x8] sm:$0xff] }
 0x52f   : > { %3935 = vmatmul.mubr.bf16.vlgmr.msra.gmra.mrb[40].mxu1 %v1499_v12  ;;  %v4253_v12 = vld [vmem:[%s4574_s24 + $0x78] sm:$0xff]  }
 0x530   : > { %3939 = vmatpush3.bf16.msra.mxu1 %v4224_v49  ;;  %3954 = vmatprep.mubr.bf16.mxu1 %v4641_v24  ;;  %v4231_v24 = vld [vmem:[%s4569_s21 + $0x138] sm:$0xff]   ;;  %v4249_v49 = vld [vmem:[%s4574_s24 + $0x68] sm:$0xff]  }
 0x531   : > { %3940 = vmatprep.subr.bf16.mxu1 %v4225_v15 }
 0x534   : > { %3941 = vmatpush3.bf16.msra.mxu1 %v4225_v15  ;;  %v4255_v15 = vld [vmem:[%s4574_s24 + $0x38] sm:$0xff]  }
 0x535   : > { %3942 = vmatprep.subr.bf16.mxu1 %v4226_v16 }
 0x538   : > { %3943 = vmatpush3.bf16.msra.mxu1 %v4226_v16  ;;  %v4932_v16 = vpack.c.bf16 %v4925_v8, %v4923_v14 }
 0x539   : > { %3944 = vmatprep.subr.bf16.mxu1 %v4227_v18 }
 0x53c   : > { %3945 = vmatpush3.bf16.msra.mxu1 %v4227_v18  ;;  %v3420_v18 = vld [vmem:[%s4559_s15 + $0x5] ss:$0 sm:$0xff] }
 0x53d   : > { %3946 = vmatprep.subr.bf16.mxu1 %v4228_v20 }
 0x540   : > { %3947 = vmatpush3.bf16.msra.mxu1 %v4228_v20 }
 0x541   : > { %3948 = vmatprep.subr.bf16.mxu1 %v4229_v21 }
 0x544   : > { %3949 = vmatpush3.bf16.msra.mxu1 %v4229_v21 }
 0x545   : > { %3950 = vmatprep.subr.bf16.mxu1 %v4230_v22 }
 0x548   : > { %3951 = vmatpush3.bf16.msra.mxu1 %v4230_v22 }
 0x549   : > { %3952 = vmatprep.subr.bf16.mxu1 %v4231_v24 }
 0x54c   : > { %3953 = vmatpush3.bf16.msra.mxu1 %v4231_v24 }
 0x54d   : > { %3998 = vmatprep.subr.bf16.mxu1 %v4468_v35 }
 0x54f   : > { %3955 = vmatmul.mubr.bf16.vlgmr.msra.gmra.mrb[40].mxu1 %v4651_v33  ;;  %v4236_v33 = vld [vmem:[%s4569_s21 + $0x1a0] sm:$0xff]  }
 0x550   : > { %4014 = vmatprep.mubr.msk.bf16.mxu1 %vm4469_vm0, %v4468_v35  ;;  %3966 = vmatprep.subr.bf16.mxu0 %v4236_v33 }
 0x551   : > { %3967 = vmatpush3.bf16.msra.mxu0 %v4236_v33  ;;  %3999 = vmatpush3.bf16.msra.mxu1 %v4240_v34  ;;  %v4256_v33 = vld [vmem:[%s5164_s5] sm:$0xff]   ;;  %v4265_v34 = vld [vmem:[%s4574_s24 + $0xa8] sm:$0xff]  }
 0x552   : > { %3968 = vmatprep.subr.bf16.mxu0 %v4237_v28  ;;  %4000 = vmatprep.subr.bf16.mxu1 %v4468_v35 }
 0x555   : > { %3969 = vmatpush3.bf16.msra.mxu0 %v4237_v28  ;;  %4001 = vmatpush3.bf16.msra.mxu1 %v4241_v46  ;;  %v4267_v46 = vld [vmem:[%s4574_s24 + $0xb8] sm:$0xff]  }
 0x556   : > { %3970 = vmatprep.subr.bf16.mxu0 %v4238_v29  ;;  %4002 = vmatprep.subr.bf16.mxu1 %v4468_v35 }
 0x559   : > { %3971 = vmatpush3.bf16.msra.mxu0 %v4238_v29  ;;  %4003 = vmatpush3.bf16.msra.mxu1 %v4243_v2 }
 0x55a   : > { %3972 = vmatprep.subr.bf16.mxu0 %v4239_v31  ;;  %4004 = vmatprep.subr.bf16.mxu1 %v4468_v35 }
 0x55d   : > { %3973 = vmatpush3.bf16.msra.mxu0 %v4239_v31  ;;  %4005 = vmatpush3.bf16.msra.mxu1 %v4245_v40 }
 0x55e   : > { %3978 = vmatprep.subr.bf16.mxu0 %v4468_v35  ;;  %4006 = vmatprep.subr.bf16.mxu1 %v4468_v35 }
 0x561   : > { %4007 = vmatpush3.bf16.msra.mxu1 %v4247_v42 }
 0x562   : > { %4008 = vmatprep.subr.bf16.mxu1 %v4468_v35 }
 0x565   : > { %4009 = vmatpush3.bf16.msra.mxu1 %v4249_v49 }
 0x566   : > { %4010 = vmatprep.subr.bf16.mxu1 %v4468_v35 }
 0x569   : > { %4011 = vmatpush3.bf16.msra.mxu1 %v4251_v10 }
 0x56a   : > { %4012 = vmatprep.subr.bf16.mxu1 %v4468_v35 }
 0x56d   : > { %4013 = vmatpush3.bf16.msra.mxu1 %v4253_v12 }
 0x570   : > { %4015 = vmatmul.mubr.bf16.vlgmr.msra.gmra.mrb[44].mxu1 %v4932_v16 }
 0x622   : > { %v3956_v17 = vpop.f32.mrb[40].mxu1 }
 0x623   : > { %v1702_v36 = vadd.f32 %v3956_v17, %v3415_v32  ;;  %v1679_v38 = vpop.f32.mrb[41].mxu1 }
 0x624   : > { %v1700_v39 = vadd.f32 %v3415_v32, %v1679_v38  ;;  %v3957_v41 = vpop.f32.mrb[42].mxu1 }
 0x625   : > { %v3418_v45 = vmul.f32 -1.442695, %v1702_v36  ;;  %v1703_v48 = vadd.f32 %v3957_v41, %v3415_v32  ;;  %v1682_v37 = vpop.f32.mrb[43].mxu1 }
 0x626   : > { %v3416_v51 = vmul.f32 -1.442695, %v1700_v39  ;;  %v1701_v52 = vadd.f32 %v3415_v32, %v1682_v37 }
 0x627   : > { %4336 = vpow2.f32 %v3418_v45  ;;  %v3419_v53 = vmul.f32 -1.442695, %v1703_v48 }
 0x628   : > { %4338 = vpow2.f32 %v3416_v51  ;;  %v3417_v19 = vmul.f32 -1.442695, %v1701_v52 }
 0x629   : > { %4340 = vpow2.f32 %v3419_v53 }
 0x62a   : > { %4342 = vpow2.f32 %v3417_v19 }
 0x631   : > { %v4337_v23 = vpop.eup %4336 }
 0x632   : > { %v4339_v54 = vpop.eup %4338  ;;  %v1718_v3 = vadd.f32 1.0, %v4337_v23 }
 0x633   : > { %v4341_v55 = vpop.eup %4340  ;;  %v1716_v13 = vadd.f32 1.0, %v4339_v54 }
 0x634   : > { %v4343_v4 = vpop.eup %4342  ;;  %4344 = vrcp.f32 %v1718_v3  ;;  %v1719_v56 = vadd.f32 1.0, %v4341_v55 }
 0x635   : > { %4346 = vrcp.f32 %v1716_v13  ;;  %v1717_v57 = vadd.f32 1.0, %v4343_v4 }
 0x636   : > { %4348 = vrcp.f32 %v1719_v56 }
 0x637   : > { %4350 = vrcp.f32 %v1717_v57 }
 0x63e   : > { %v4345_v43 = vpop.eup %4344 }
 0x63f   : > { %v4347_v58 = vpop.eup %4346  ;;  %v1730_v60 = vmul.f32 %v4345_v43, %v1702_v36 }
 0x640   : > { %v4349_v5 = vpop.eup %4348  ;;  %v1728_v44 = vmul.f32 %v4347_v58, %v1700_v39 }
 0x641   : > { %v4351_v59 = vpop.eup %4350  ;;  %v1731_v61 = vmul.f32 %v4349_v5, %v1703_v48  ;;  %v4257_v48 = vld [vmem:[%s5164_s5 + $0x8] sm:$0xff]  }
 0x642   : > { %v1729_v30 = vmul.f32 %v4351_v59, %v1701_v52  ;;  %v4964_v59 = vld [vmem:[%s5165_s6] sm:$0xff]  }
 0x643   : > { %v1733_v62 = vpack.c.bf16 %v1731_v61, %v1730_v60  ;;  %v2235_v28 = vpop.f32.mrb[44].mxu1  ;;  %v4259_v60 = vld [vmem:[%s4574_s24 + $0x80] sm:$0xff]   ;;  %v4970_v61 = vld [vmem:[%s5165_s6 + $0x8] sm:$0xff]  }
 0x644   : > { %v1732_v63 = vpack.c.bf16 %v1729_v30, %v1728_v44  ;;  %v4016_v31 = vpop.f32.mrb[45].mxu1  ;;  %v4261_v44 = vld [vmem:[%s4574_s24 + $0x88] sm:$0xff]   ;;  %v4262_v30 = vld [vmem:[%s4574_s24 + $0x90] sm:$0xff]  }
 0x645   : > { %v2238_v17 = vpop.f32.mrb[46].mxu1 }
 0x646   : > { %3974 = vmatprep.mubr.bf16.mxu0 %v1732_v63  ;;  %v2242_v38 = vpack.c.bf16 %v2238_v17, %v2235_v28  ;;  %v4017_v39 = vpop.f32.mrb[47].mxu1  ;;  %v4264_v63 = vld [vmem:[%s4574_s24 + $0xa0] sm:$0xff]  }
 0x647   : > { %3975 = vmatmul.mubr.bf16.vlgmr.msra.gmra.mrb[20].mxu0 %v1733_v62  ;;  %v4263_v62 = vld [vmem:[%s4574_s24 + $0x98] sm:$0xff]   ;;  %v3429_v17 = vld [vmem:[%s4559_s15 + $0x6] ss:$0 sm:$0xff] }
 0x648   : > { %3994 = vmatprep.mubr.msk.bf16.mxu0 %vm4469_vm0, %v4468_v35  ;;  %3979 = vmatpush3.bf16.msra.mxu0 %v4242_v0  ;;  %v4266_v0 = vld [vmem:[%s4574_s24 + $0xb0] sm:$0xff]  }
 0x649   : > { %3980 = vmatprep.subr.bf16.mxu0 %v4468_v35 }
 0x64c   : > { %3981 = vmatpush3.bf16.msra.mxu0 %v4244_v1 }
 0x64d   : > { %3982 = vmatprep.subr.bf16.mxu0 %v4468_v35 }
 0x650   : > { %3983 = vmatpush3.bf16.msra.mxu0 %v4246_v7 }
 0x651   : > { %3984 = vmatprep.subr.bf16.mxu0 %v4468_v35 }
 0x654   : > { %3985 = vmatpush3.bf16.msra.mxu0 %v4248_v47 }
 0x655   : > { %3986 = vmatprep.subr.bf16.mxu0 %v4468_v35 }
 0x658   : > { %3987 = vmatpush3.bf16.msra.mxu0 %v4250_v9 }
 0x659   : > { %3988 = vmatprep.subr.bf16.mxu0 %v4468_v35 }
 0x65c   : > { %3989 = vmatpush3.bf16.msra.mxu0 %v4252_v50 }
 0x65d   : > { %3990 = vmatprep.subr.bf16.mxu0 %v4468_v35 }
 0x660   : > { %3991 = vmatpush3.bf16.msra.mxu0 %v4254_v6 }
 0x661   : > { %3992 = vmatprep.subr.bf16.mxu0 %v4468_v35 }
 0x664   : > { %3993 = vmatpush3.bf16.msra.mxu0 %v4255_v15 }
 0x665   : > { %4018 = vmatprep.subr.bf16.mxu0 %v2242_v38 }
 0x667   : > { %3995 = vmatmul.mubr.bf16.vlgmr.msra.gmra.mrb[24].mxu0 %v4932_v16 }
 0x668   : > { %4020 = vmatprep.mubr.msk.bf16.mxu0 %vm2253_vm3, %v4256_v33  ;;  %4019 = vmatpush3.bf16.msra.mxu0 %v2242_v38 }
 0x66f   : > { %4021 = vmatmul.mubr.msk.bf16.vlgmr.msra.gmra.mrb[28].mxu0 %vm2253_vm3, %v4257_v48 }
 0x670   : > { %4026 = vmatprep.mubr.msk.bf16.mxu0 %vm2253_vm3, %v4964_v59 }
 0x71a   : > { %v3976_v20 = vpop.f32.mrb[20].mxu0 }
 0x71b   : > { %v1831_v21 = vadd.f32 %v3976_v20, %v3420_v18  ;;  %v1822_v22 = vpop.f32.mrb[21].mxu0 }
 0x71c   : > { %v3977_v24 = vpop.f32.mrb[22].mxu0  ;;  %v1823_v25 = vadd.f32 %v3420_v18, %v1822_v22 }
 0x71d   : > { %1841 = vadd.xlane.f32.xlu1 %v1831_v21  ;;  %v1825_v11 = vpop.f32.mrb[23].mxu0  ;;  %v1834_v27 = vadd.f32 %v3977_v24, %v3420_v18 }
 0x71e   : > { %v1826_v26 = vadd.f32 %v3420_v18, %v1825_v11 }
 0x721   : > { %1837 = vadd.xlane.f32.xlu1 %v1823_v25 }
 0x725   : > { %1839 = vadd.xlane.f32.xlu1 %v1826_v26 }
 0x729   : > { %1843 = vadd.xlane.f32.xlu1 %v1834_v27 }
 0x73a   : > { %v2145_v29 = vpop.f32.mrb[24].mxu0 }
 0x73b   : > { %v3996_v32 = vpop.f32.mrb[25].mxu0 }
 0x73c   : > { %v2148_v36 = vpop.f32.mrb[26].mxu0 }
 0x73d   : > { %v2152_v41 = vpack.c.bf16 %v2148_v36, %v2145_v29  ;;  %v3997_v45 = vpop.f32.mrb[27].mxu0 }
 0x73e   : > { %v3430_v45 = vld [vmem:[%s4559_s15 + $0x7] ss:$0 sm:$0xff]  ;;  %s4470_s15 = smov [#allocation4]  }
 0x73f   : > { %4024 = vmatprep.subr.bf16.mxu0 %v2152_v41 }
 0x740   : > { %4025 = vmatpush3.bf16.msra.mxu0 %v2152_v41 }
 0x741   : > { %4030 = vmatprep.subr.bf16.mxu0 %v4259_v60 }
 0x743   : > { %4027 = vmatmul.mubr.msk.bf16.vlgmr.msra.gmra.mrb[28].mxu0 %vm2253_vm3, %v4970_v61 }
 0x744   : > { %4031 = vmatpush3.bf16.msra.mxu0 %v4259_v60 }
 0x745   : > { %4032 = vmatprep.subr.bf16.mxu0 %v4261_v44 }
 0x748   : > { %4033 = vmatpush3.bf16.msra.mxu0 %v4261_v44 }
 0x749   : > { %4034 = vmatprep.subr.bf16.mxu0 %v4262_v30 }
 0x74c   : > { %4035 = vmatpush3.bf16.msra.mxu0 %v4262_v30  ;;  %v4268_v30 = vld [vmem:[%s4574_s24 + $0xc0] sm:$0xff]  }
 0x74d   : > { %4036 = vmatprep.subr.bf16.mxu0 %v4263_v62  ;;  %4050 = vmatprep.subr.bf16.mxu1 %v4268_v30 }
 0x74e   : > { %4051 = vmatpush3.bf16.msra.mxu1 %v4268_v30 }
 0x750   : > { %4037 = vmatpush3.bf16.msra.mxu0 %v4263_v62  ;;  %v4269_v62 = vld [vmem:[%s4574_s24 + $0xc8] sm:$0xff]  }
 0x751   : > { %4038 = vmatprep.subr.bf16.mxu0 %v4264_v63  ;;  %4052 = vmatprep.subr.bf16.mxu1 %v4269_v62 }
 0x752   : > { %4053 = vmatpush3.bf16.msra.mxu1 %v4269_v62 }
 0x754   : > { %4039 = vmatpush3.bf16.msra.mxu0 %v4264_v63  ;;  %v4270_v63 = vld [vmem:[%s4574_s24 + $0xd0] sm:$0xff]  }
 0x755   : > { %4040 = vmatprep.subr.bf16.mxu0 %v4265_v34  ;;  %4054 = vmatprep.subr.bf16.mxu1 %v4270_v63 }
 0x756   : > { %4055 = vmatpush3.bf16.msra.mxu1 %v4270_v63 }
 0x758   : > { %4041 = vmatpush3.bf16.msra.mxu0 %v4265_v34  ;;  %v4271_v34 = vld [vmem:[%s4574_s24 + $0xd8] sm:$0xff]  }
 0x759   : > { %4042 = vmatprep.subr.bf16.mxu0 %v4266_v0  ;;  %4056 = vmatprep.subr.bf16.mxu1 %v4271_v34 }
 0x75a   : > { %4057 = vmatpush3.bf16.msra.mxu1 %v4271_v34 }
 0x75c   : > { %4043 = vmatpush3.bf16.msra.mxu0 %v4266_v0  ;;  %v4272_v0 = vld [vmem:[%s4574_s24 + $0xe0] sm:$0xff]  }
 0x75d   : > { %4044 = vmatprep.subr.bf16.mxu0 %v4267_v46  ;;  %4058 = vmatprep.subr.bf16.mxu1 %v4272_v0 }
 0x75e   : > { %4059 = vmatpush3.bf16.msra.mxu1 %v4272_v0 }
 0x760   : > { %4045 = vmatpush3.bf16.msra.mxu0 %v4267_v46  ;;  %v4273_v46 = vld [vmem:[%s4574_s24 + $0xe8] sm:$0xff]  }
 0x761   : > { %4078 = vmatprep.subr.bf16.mxu0 %v4468_v35  ;;  %4060 = vmatprep.subr.bf16.mxu1 %v4273_v46 }
 0x762   : > { %4061 = vmatpush3.bf16.msra.mxu1 %v4273_v46 }
 0x7aa   : > { %v1842_v37 = vpop.xlane.xlu1 %1841 }
 0x7ab   : > { %v1847_v51 = vmul.f32 0.03125, %v1842_v37 }
 0x7ad   : > { %v4945_v52 = vsub.f32 %v1831_v21, %v1847_v51  ;;  %v1867_v1 = vmul.f32 96.0, %v1847_v51 }
 0x7ae   : > { %v1838_v53 = vpop.xlane.xlu1 %1837 }
 0x7af   : > { %v1845_v19 = vmul.f32 0.03125, %v1838_v53  ;;  %v1855_v23 = vmul.f32 %v4945_v52, %v4945_v52  ;;  %v1871_v2 = vmul.f32 %v1867_v1, %v1847_v51  ;;  %v4274_v1 = vld [vmem:[%s4574_s24 + $0xf0] sm:$0xff]  }
 0x7b0   : > { %4062 = vmatprep.subr.bf16.mxu1 %v4274_v1 }
 0x7b1   : > { %1861 = vadd.xlane.f32.xlu1 %v1855_v23  ;;  %v4949_v54 = vsub.f32 %v1823_v25, %v1845_v19  ;;  %v1865_v7 = vmul.f32 96.0, %v1845_v19  ;;  %4063 = vmatpush3.bf16.msra.mxu1 %v4274_v1 }
 0x7b2   : > { %v1840_v3 = vpop.xlane.xlu1 %1839 }
 0x7b3   : > { %v1846_v55 = vmul.f32 0.03125, %v1840_v3  ;;  %v1853_v13 = vmul.f32 %v4949_v54, %v4949_v54  ;;  %v1869_v9 = vmul.f32 %v1865_v7, %v1845_v19  ;;  %v4396_v3 = vld [vmem:[#allocation4] sm:$0xff]  ;;  %v3566_v7 = vld [vmem:[%s4564_s18] ss:$0 sm:$0xff] }
 0x7b5   : > { %1857 = vadd.xlane.f32.xlu1 %v1853_v13  ;;  %v4953_v4 = vsub.f32 %v1826_v26, %v1846_v55  ;;  %v1866_v49 = vmul.f32 96.0, %v1846_v55 }
 0x7b6   : > { %v1844_v56 = vpop.xlane.xlu1 %1843 }
 0x7b7   : > { %v1848_v57 = vmul.f32 0.03125, %v1844_v56  ;;  %v1854_v43 = vmul.f32 %v4953_v4, %v4953_v4  ;;  %v1870_v15 = vmul.f32 %v1866_v49, %v1846_v55 }
 0x7b9   : > { %1859 = vadd.xlane.f32.xlu1 %v1854_v43  ;;  %v4957_v58 = vsub.f32 %v1834_v27, %v1848_v57  ;;  %v1868_v18 = vmul.f32 96.0, %v1848_v57  ;;  %v4398_v43 = vld [vmem:[#allocation4 + $0x10] sm:$0xff] }
 0x7bb   : > { %v1856_v5 = vmul.f32 %v4957_v58, %v4957_v58  ;;  %v1872_v11 = vmul.f32 %v1868_v18, %v1848_v57 }
 0x7bd   : > { %1863 = vadd.xlane.f32.xlu1 %v1856_v5  ;;  %v4399_v5 = vld [vmem:[#allocation4 + $0x18] sm:$0xff] }
 0x83e   : > { %v1862_v40 = vpop.xlane.xlu1 %1861 }
 0x83f   : > { %v1875_v47 = vsub.f32 %v1862_v40, %v1871_v2  ;;  %v4275_v2 = vld [vmem:[%s4574_s24 + $0xf8] sm:$0xff]  }
 0x840   : > { %4064 = vmatprep.subr.bf16.mxu1 %v4275_v2 }
 0x841   : > { %v1879_v42 = vmul.f32 0.03125, %v1875_v47  ;;  %4065 = vmatpush3.bf16.msra.mxu1 %v4275_v2 }
 0x842   : > { %v1858_v50 = vpop.xlane.xlu1 %1857  ;;  %4070 = vmatprep.subr.bf16.mxu1 %v4468_v35 }
 0x843   : > { %v1873_v10 = vsub.f32 %v1858_v50, %v1869_v9  ;;  %v1883_v6 = vadd.f32 1e-05, %v1879_v42 }
 0x845   : > { %v1877_v12 = vmul.f32 0.03125, %v1873_v10  ;;  %4352 = vrsqrt.f32 %v1883_v6 }
 0x846   : > { %v1860_v20 = vpop.xlane.xlu1 %1859 }
 0x847   : > { %v1881_v21 = vadd.f32 1e-05, %v1877_v12  ;;  %v1874_v22 = vsub.f32 %v1860_v20, %v1870_v15 }
 0x849   : > { %4354 = vrsqrt.f32 %v1881_v21  ;;  %v1878_v24 = vmul.f32 0.03125, %v1874_v22 }
 0x84a   : > { %v1864_v25 = vpop.xlane.xlu1 %1863 }
 0x84b   : > { %v1882_v26 = vadd.f32 1e-05, %v1878_v24  ;;  %v1876_v27 = vsub.f32 %v1864_v25, %v1872_v11 }
 0x84d   : > { %4356 = vrsqrt.f32 %v1882_v26  ;;  %v1880_v33 = vmul.f32 0.03125, %v1876_v27 }
 0x84f   : > { %v1884_v28 = vadd.f32 1e-05, %v1880_v33  ;;  %v4353_v29 = vpop.eup %4352 }
 0x850   : > { %v1891_v36 = vmul.f32 %v4353_v29, %v4945_v52 }
 0x851   : > { %4358 = vrsqrt.f32 %v1884_v28 }
 0x852   : > { %v1901_v51 = vmul.f32 %v3429_v17, %v1891_v36 }
 0x853   : > { %v4355_v31 = vpop.eup %4354 }
 0x854   : > { %v1889_v32 = vmul.f32 %v4355_v31, %v4949_v54  ;;  %v4397_v54 = vld [vmem:[#allocation4 + $0x8] sm:$0xff]  ;;  %v1911_v56 = vadd.f32 %v3430_v45, %v1901_v51 }
 0x856   : > { %v1899_v38 = vmul.f32 %v3429_v17, %v1889_v32 }
 0x857   : > { %v4357_v39 = vpop.eup %4356 }
 0x858   : > { %v1890_v41 = vmul.f32 %v4357_v39, %v4953_v4  ;;  %v1909_v37 = vadd.f32 %v3430_v45, %v1899_v38 }
 0x85a   : > { %v1900_v48 = vmul.f32 %v3429_v17, %v1890_v41  ;;  %v4990_v55 = vadd.f32 %v4396_v3, %v1909_v37 }
 0x85b   : > { %v4359_v53 = vpop.eup %4358 }
 0x85c   : > { %v1892_v19 = vmul.f32 %v4359_v53, %v4957_v58  ;;  %v1910_v23 = vadd.f32 %v3430_v45, %v1900_v48  ;;  %v4996_v58 = vadd.f32 %v4398_v43, %v1911_v56  ;;  %v3571_v48 = vld [vmem:[%s4564_s18 + $0x1] ss:$0 sm:$0xff] }
 0x85e   : > { %v4992_v13 = vadd.f32 %v4397_v54, %v1910_v23  ;;  %v1902_v52 = vmul.f32 %v3429_v17, %v1892_v19 }
 0x860   : > { %v2061_v4 = vpack.c.bf16 %v4992_v13, %v4990_v55  ;;  %v1912_v57 = vadd.f32 %v3430_v45, %v1902_v52 }
 0x862   : > { %4046 = vmatprep.mubr.bf16.mxu0 %v2061_v4  ;;  %v4998_v60 = vadd.f32 %v4399_v5, %v1912_v57 }
 0x864   : > { %v2062_v44 = vpack.c.bf16 %v4998_v60, %v4996_v58 }
 0x866   : > { %4047 = vmatmul.mubr.bf16.vlgmr.msra.gmra.mrb[28].mxu0 %v2062_v44 }
 0x867   : > { %4094 = vmatprep.mubr.msk.bf16.mxu0 %vm4469_vm0, %v4468_v35 }
 0x939   : > { %v4048_v40 = vpop.f32.mrb[28].mxu0 }
 0x93a   : > { %v2483_v47 = vadd.f32 %v4048_v40, %v3566_v7  ;;  %v2456_v42 = vpop.f32.mrb[29].mxu0 }
 0x93b   : > { %v2481_v9 = vadd.f32 %v3566_v7, %v2456_v42  ;;  %v4049_v49 = vpop.f32.mrb[30].mxu0  ;;  %v4278_v42 = vld [vmem:[%s4574_s24 + $0x148] sm:$0xff]  }
 0x93c   : > { %v3569_v50 = vmul.f32 -1.442695, %v2483_v47  ;;  %v2484_v10 = vadd.f32 %v4049_v49, %v3566_v7  ;;  %v2459_v6 = vpop.f32.mrb[31].mxu0  ;;  %v4282_v49 = vld [vmem:[%s4574_s24 + $0x158] sm:$0xff]  }
 0x93d   : > { %v3567_v12 = vmul.f32 -1.442695, %v2481_v9  ;;  %v2482_v15 = vadd.f32 %v3566_v7, %v2459_v6 }
 0x93e   : > { %4360 = vpow2.f32 %v3569_v50  ;;  %v3570_v18 = vmul.f32 -1.442695, %v2484_v10  ;;  %v4284_v50 = vld [vmem:[%s4574_s24 + $0x160] sm:$0xff]  }
 0x93f   : > { %4362 = vpow2.f32 %v3567_v12  ;;  %v3568_v20 = vmul.f32 -1.442695, %v2482_v15 }
 0x940   : > { %4364 = vpow2.f32 %v3570_v18 }
 0x941   : > { %4366 = vpow2.f32 %v3568_v20 }
 0x948   : > { %v4361_v21 = vpop.eup %4360 }
 0x949   : > { %v4363_v22 = vpop.eup %4362  ;;  %v2499_v24 = vadd.f32 1.0, %v4361_v21 }
 0x94a   : > { %v4365_v11 = vpop.eup %4364  ;;  %v2497_v25 = vadd.f32 1.0, %v4363_v22 }
 0x94b   : > { %v4367_v26 = vpop.eup %4366  ;;  %4368 = vrcp.f32 %v2499_v24  ;;  %v2500_v27 = vadd.f32 1.0, %v4365_v11 }
 0x94c   : > { %4370 = vrcp.f32 %v2497_v25  ;;  %v2498_v33 = vadd.f32 1.0, %v4367_v26 }
 0x94d   : > { %4372 = vrcp.f32 %v2500_v27 }
 0x94e   : > { %4374 = vrcp.f32 %v2498_v33 }
 0x955   : > { %v4369_v28 = vpop.eup %4368 }
 0x956   : > { %v4371_v29 = vpop.eup %4370  ;;  %v2511_v17 = vmul.f32 %v4369_v28, %v2483_v47  ;;  %v4276_v47 = vld [vmem:[%s4574_s24 + $0x140] sm:$0xff]  }
 0x957   : > { %v4373_v31 = vpop.eup %4372  ;;  %v2509_v38 = vmul.f32 %v4371_v29, %v2481_v9  ;;  %4079 = vmatpush3.bf16.msra.mxu0 %v4276_v47  ;;  %v4280_v9 = vld [vmem:[%s4574_s24 + $0x150] sm:$0xff]   ;;  %v4285_v47 = vld [vmem:[%s4574_s24 + $0x120] sm:$0xff]  }
 0x958   : > { %v4375_v32 = vpop.eup %4374  ;;  %v2512_v36 = vmul.f32 %v4373_v31, %v2484_v10  ;;  %4080 = vmatprep.subr.bf16.mxu0 %v4468_v35  ;;  %v4288_v10 = vld [vmem:[%s4574_s24 + $0x170] sm:$0xff]  }
 0x959   : > { %v2510_v39 = vmul.f32 %v4375_v32, %v2482_v15 }
 0x95a   : > { %v2514_v41 = vpack.c.bf16 %v2512_v36, %v2511_v17 }
 0x95b   : > { %v2513_v45 = vpack.c.bf16 %v2510_v39, %v2509_v38  ;;  %4081 = vmatpush3.bf16.msra.mxu0 %v4278_v42  ;;  %v4287_v42 = vld [vmem:[%s4574_s24 + $0x128] sm:$0xff]  }
 0x95c   : > { %4082 = vmatprep.subr.bf16.mxu0 %v4468_v35 }
 0x95d   : > { %4066 = vmatprep.mubr.bf16.mxu1 %v2513_v45 }
 0x95e   : > { %4067 = vmatmul.mubr.bf16.vlgmr.msra.gmra.mrb[48].mxu1 %v2514_v41 }
 0x95f   : > { %4074 = vmatprep.mubr.msk.bf16.mxu1 %vm4469_vm0, %v4468_v35  ;;  %4083 = vmatpush3.bf16.msra.mxu0 %v4280_v9  ;;  %v4289_v9 = vld [vmem:[%s4574_s24 + $0x130] sm:$0xff]  }
 0x960   : > { %4084 = vmatprep.subr.bf16.mxu0 %v4468_v35 }
 0x963   : > { %4085 = vmatpush3.bf16.msra.mxu0 %v4282_v49  ;;  %v4291_v49 = vld [vmem:[%s4574_s24 + $0x138] sm:$0xff]  }
 0x964   : > { %4086 = vmatprep.subr.bf16.mxu0 %v4468_v35 }
 0x967   : > { %4087 = vmatpush3.bf16.msra.mxu0 %v4284_v50  ;;  %v4290_v50 = vld [vmem:[%s4574_s24 + $0x178] sm:$0xff]  }
 0x968   : > { %4088 = vmatprep.subr.bf16.mxu0 %v4468_v35 }
 0xa31   : > { %v4068_v37 = vpop.f32.mrb[48].mxu1 }
 0xa32   : > { %v2612_v51 = vadd.f32 %v4068_v37, %v3571_v48  ;;  %v2603_v53 = vpop.f32.mrb[49].mxu1  ;;  %v3580_v37 = vld [vmem:[%s4564_s18 + $0x2] ss:$0 sm:$0xff] }
 0xa33   : > { %v4069_v19 = vpop.f32.mrb[50].mxu1  ;;  %v2604_v3 = vadd.f32 %v3571_v48, %v2603_v53  ;;  %v3581_v53 = vld [vmem:[%s4564_s18 + $0x3] ss:$0 sm:$0xff] }
 0xa34   : > { %2622 = vadd.xlane.f32.xlu1 %v2612_v51  ;;  %v2606_v23 = vpop.f32.mrb[51].mxu1  ;;  %v2615_v52 = vadd.f32 %v4069_v19, %v3571_v48 }
 0xa35   : > { %v2607_v54 = vadd.f32 %v3571_v48, %v2606_v23 }
 0xa38   : > { %2618 = vadd.xlane.f32.xlu1 %v2604_v3 }
 0xa3c   : > { %2620 = vadd.xlane.f32.xlu1 %v2607_v54 }
 0xa40   : > { %2624 = vadd.xlane.f32.xlu1 %v2615_v52 }
 0xac1   : > { %v2623_v56 = vpop.xlane.xlu1 %2622 }
 0xac2   : > { %v2628_v4 = vmul.f32 0.03125, %v2623_v56 }
 0xac4   : > { %v5017_v57 = vsub.f32 %v2612_v51, %v2628_v4 }
 0xac5   : > { %v2619_v43 = vpop.xlane.xlu1 %2618 }
 0xac6   : > { %v2626_v5 = vmul.f32 0.03125, %v2619_v43  ;;  %v2636_v44 = vmul.f32 %v5017_v57, %v5017_v57 }
 0xac8   : > { %2642 = vadd.xlane.f32.xlu0 %v2636_v44  ;;  %v5021_v30 = vsub.f32 %v2604_v3, %v2626_v5  ;;  %v2646_v12 = vmul.f32 96.0, %v2626_v5 }
 0xac9   : > { %v2621_v62 = vpop.xlane.xlu1 %2620 }
 0xaca   : > { %v2627_v63 = vmul.f32 0.03125, %v2621_v62  ;;  %v2634_v34 = vmul.f32 %v5021_v30, %v5021_v30  ;;  %v2650_v21 = vmul.f32 %v2646_v12, %v2626_v5 }
 0xacc   : > { %2638 = vadd.xlane.f32.xlu1 %v2634_v34  ;;  %v5025_v0 = vsub.f32 %v2607_v54, %v2627_v63  ;;  %v2647_v22 = vmul.f32 96.0, %v2627_v63 }
 0xacd   : > { %v2625_v46 = vpop.xlane.xlu1 %2624 }
 0xace   : > { %v2629_v1 = vmul.f32 0.03125, %v2625_v46  ;;  %v2635_v2 = vmul.f32 %v5025_v0, %v5025_v0  ;;  %v2651_v27 = vmul.f32 %v2647_v22, %v2627_v63  ;;  %v4293_v22 = vld [vmem:[%s4574_s24 + $0x188] sm:$0xff]  }
 0xad0   : > { %2640 = vadd.xlane.f32.xlu1 %v2635_v2  ;;  %v5029_v7 = vsub.f32 %v2615_v52, %v2629_v1  ;;  %v2649_v33 = vmul.f32 96.0, %v2629_v1 }
 0xad2   : > { %v2637_v40 = vmul.f32 %v5029_v7, %v5029_v7  ;;  %v2653_v17 = vmul.f32 %v2649_v33, %v2629_v1  ;;  %v4299_v33 = vld [vmem:[%s4574_s24 + $0x1b8] sm:$0xff]  }
 0xad4   : > { %2644 = vadd.xlane.f32.xlu1 %v2637_v40  ;;  %v4283_v40 = vld [vmem:[%s4574_s24 + $0x118] sm:$0xff]  }
 0xb01   : > { %2702 = vxpose.xlu1.c.b16.start [1/2] (short) (narrow) %v4964_v59, 16  ;;  %v4286_v59 = vld [vmem:[%s4574_s24 + $0x168] sm:$0xff]  }
 0xb02   : > { %4089 = vmatpush3.bf16.msra.mxu0 %v4286_v59 }
 0xb03   : > { %4090 = vmatprep.subr.bf16.mxu0 %v4468_v35 }
 0xb05   : > { %2703 = vxpose.xlu1.c.b16.end [2/2] (short) (narrow) %v4970_v61, 16  ;;  %v2648_v61 = vmul.f32 96.0, %v2628_v4 }
 0xb06   : > { %4091 = vmatpush3.bf16.msra.mxu0 %v4288_v10 }
 0xb07   : > { %4092 = vmatprep.subr.bf16.mxu0 %v4468_v35  ;;  %v2652_v6 = vmul.f32 %v2648_v61, %v2628_v4 }
 0xb0a   : > { %4093 = vmatpush3.bf16.msra.mxu0 %v4290_v50 }
 0xb0b   : > { %4118 = vmatprep.subr.bf16.mxu0 %v4468_v35 }
 0xb55   : > { %v2643_v15 = vpop.xlane.xlu0 %2642 }
 0xb56   : > { %v2656_v18 = vsub.f32 %v2643_v15, %v2652_v6 }
 0xb58   : > { %v2660_v20 = vmul.f32 0.03125, %v2656_v18 }
 0xb59   : > { %v2639_v24 = vpop.xlane.xlu1 %2638 }
 0xb5a   : > { %v2664_v11 = vadd.f32 1e-05, %v2660_v20  ;;  %v2654_v25 = vsub.f32 %v2639_v24, %v2650_v21  ;;  %v4294_v24 = vld [vmem:[%s4574_s24 + $0x190] sm:$0xff]  }
 0xb5c   : > { %4376 = vrsqrt.f32 %v2664_v11  ;;  %v2658_v26 = vmul.f32 0.03125, %v2654_v25  ;;  %v4295_v11 = vld [vmem:[%s4574_s24 + $0x198] sm:$0xff]   ;;  %v4296_v25 = vld [vmem:[%s4574_s24 + $0x1a0] sm:$0xff]  }
 0xb5d   : > { %v2641_v28 = vpop.xlane.xlu1 %2640 }
 0xb5e   : > { %v2662_v29 = vadd.f32 1e-05, %v2658_v26  ;;  %v2655_v31 = vsub.f32 %v2641_v28, %v2651_v27  ;;  %v4297_v26 = vld [vmem:[%s4574_s24 + $0x1a8] sm:$0xff]   ;;  %v4298_v27 = vld [vmem:[%s4574_s24 + $0x1b0] sm:$0xff]  }
 0xb60   : > { %4378 = vrsqrt.f32 %v2662_v29  ;;  %v2659_v32 = vmul.f32 0.03125, %v2655_v31  ;;  %v3599_v29 = vld [vmem:[%s4564_s18 + $0x4] ss:$0 sm:$0xff] }
 0xb61   : > { %v2645_v36 = vpop.xlane.xlu1 %2644 }
 0xb62   : > { %v2663_v38 = vadd.f32 1e-05, %v2659_v32  ;;  %v2657_v39 = vsub.f32 %v2645_v36, %v2653_v17 }
 0xb64   : > { %4380 = vrsqrt.f32 %v2663_v38  ;;  %v2661_v41 = vmul.f32 0.03125, %v2657_v39 }
 0xb66   : > { %v4377_v45 = vpop.eup %4376  ;;  %v2665_v48 = vadd.f32 1e-05, %v2661_v41 }
 0xb67   : > { %v2672_v51 = vmul.f32 %v4377_v45, %v5017_v57  ;;  %v2710_v2 = vpop.trf.xlu1 }
 0xb68   : > { %4382 = vrsqrt.f32 %v2665_v48 }
 0xb69   : > { %v2682_v19 = vmul.f32 %v3580_v37, %v2672_v51 }
 0xb6a   : > { %v4379_v23 = vpop.eup %4378 }
 0xb6b   : > { %v2670_v3 = vmul.f32 %v4379_v23, %v5021_v30  ;;  %v2692_v54 = vadd.f32 %v3581_v53, %v2682_v19 }
 0xb6d   : > { %v2680_v52 = vmul.f32 %v3580_v37, %v2670_v3  ;;  %v2696_v56 = vadd.f32 %v2692_v54, %v4996_v58 }
 0xb6e   : > { %v4381_v4 = vpop.eup %4380 }
 0xb6f   : > { %v2671_v43 = vmul.f32 %v4381_v4, %v5025_v0  ;;  %v2690_v5 = vadd.f32 %v3581_v53, %v2680_v52  ;;  %3113 = vst [vmem:[#allocation4 + $0x10] sm:$0xff] %v2696_v56 }
 0xb71   : > { %v2681_v44 = vmul.f32 %v3580_v37, %v2671_v43  ;;  %v2694_v62 = vadd.f32 %v2690_v5, %v4990_v55 }
 0xb72   : > { %v4383_v63 = vpop.eup %4382 }
 0xb73   : > { %v2673_v57 = vmul.f32 %v4383_v63, %v5029_v7  ;;  %v2691_v34 = vadd.f32 %v3581_v53, %v2681_v44  ;;  %3111 = vst [vmem:[#allocation4] sm:$0xff] %v2694_v62  ;;  %v4277_v7 = vld [vmem:[%s4574_s24 + $0x100] sm:$0xff]  }
 0xb75   : > { %v2695_v30 = vadd.f32 %v2691_v34, %v4992_v13  ;;  %v2683_v46 = vmul.f32 %v3580_v37, %v2673_v57  ;;  %v4279_v13 = vld [vmem:[%s4574_s24 + $0x108] sm:$0xff]  }
 0xb77   : > { %v2698_v1 = vpack.c.bf16 %v2695_v30, %v2694_v62  ;;  %3112 = vst [vmem:[#allocation4 + $0x8] sm:$0xff] %v2695_v30  ;;  %v2693_v58 = vadd.f32 %v3581_v53, %v2683_v46 }
 0xb79   : > { %4071 = vmatpush3.bf16.msra.mxu1 %v2698_v1  ;;  %v2697_v0 = vadd.f32 %v2693_v58, %v4998_v60  ;;  %v4281_v60 = vld [vmem:[%s4574_s24 + $0x110] sm:$0xff]  }
 0xb7a   : > { %4072 = vmatprep.subr.bf16.mxu1 %v4468_v35 }
 0xb7b   : > { %v2699_v55 = vpack.c.bf16 %v2697_v0, %v2696_v56  ;;  %3114 = vst [vmem:[#allocation4 + $0x18] sm:$0xff] %v2697_v0  ;;  %v3602_v56 = vld [vmem:[%s4564_s18 + $0x5] ss:$0 sm:$0xff] }
 0xb7d   : > { %4073 = vmatpush3.bf16.msra.mxu1 %v2699_v55 }
 0xb7e   : > { %4098 = vmatprep.subr.bf16.mxu1 %v4468_v35 }
 0xb80   : > { %4075 = vmatmul.mubr.msk.bf16.vlgmr.msra.gmra.mrb[52].mxu1 %vm879_vm1, %v2710_v2 }
 0xb81   : > { %4099 = vmatpush3.bf16.msra.mxu1 %v4277_v7  ;;  %4114 = vmatprep.mubr.msk.bf16.mxu1 %vm4469_vm0, %v4468_v35 }
 0xb82   : > { %4100 = vmatprep.subr.bf16.mxu1 %v4468_v35 }
 0xb85   : > { %4101 = vmatpush3.bf16.msra.mxu1 %v4279_v13 }
 0xb86   : > { %4102 = vmatprep.subr.bf16.mxu1 %v4468_v35 }
 0xb89   : > { %4103 = vmatpush3.bf16.msra.mxu1 %v4281_v60 }
 0xb8a   : > { %4104 = vmatprep.subr.bf16.mxu1 %v4468_v35 }
 0xb8d   : > { %4105 = vmatpush3.bf16.msra.mxu1 %v4283_v40 }
 0xb8e   : > { %4106 = vmatprep.subr.bf16.mxu1 %v4468_v35 }
 0xb91   : > { %4107 = vmatpush3.bf16.msra.mxu1 %v4285_v47 }
 0xb92   : > { %4108 = vmatprep.subr.bf16.mxu1 %v4468_v35 }
 0xb95   : > { %4109 = vmatpush3.bf16.msra.mxu1 %v4287_v42 }
 0xb96   : > { %4110 = vmatprep.subr.bf16.mxu1 %v4468_v35 }
 0xb99   : > { %4111 = vmatpush3.bf16.msra.mxu1 %v4289_v9 }
 0xb9a   : > { %4112 = vmatprep.subr.bf16.mxu1 %v4468_v35 }
 0xb9d   : > { %4113 = vmatpush3.bf16.msra.mxu1 %v4291_v49 }
 0xba0   : > { %4115 = vmatmul.mubr.bf16.vlgmr.msra.gmra.mrb[56].mxu1 %v4932_v16  ;;  %v4292_v16 = vld [vmem:[%s4574_s24 + $0x180] sm:$0xff]   ;;  %s3136_s24 = sshll.u32 %s4470_s15, 4  ;;  %s3137_s24 = int_to_ptr.vmem [resolvable:$true] %s3136_s24 }
 0xba1   : > { %s4400_s20 = scalar_lea.vmem %s3137_s24, 512  ;;  %p4407_p9 = scmp.lt.s32.totalorder %s3137_s24, %s3137_s24 }
 0xba2   : > { %p4401_p6 = scmp.ne.s32.totalorder %s3137_s24, %s4400_s20  ;;  %p4408_p10 = scmp.lt.s32.totalorder %s4400_s20, %s4400_s20 }
 0xba4   : > { %p4402_p7 = pnand %p4401_p6, %p4159_p5  ;;  %p4409_p11 = por %p4408_p10, %p4407_p9 }
 0xba6   : > { %p4403_p8 = pneg %p4402_p7 }
 0xba8   : > { %p4410_p12 = pnand %p4409_p11, %p4403_p8 }
 0xc53   : > { %v2755_v59 = vpop.f32.mrb[52].mxu1 }
 0xc54   : > { %v4076_v10 = vpop.f32.mrb[53].mxu1 }
 0xc55   : > { %v2758_v61 = vpop.f32.mrb[54].mxu1 }
 0xc56   : > { %v2762_v6 = vpack.c.bf16 %v2758_v61, %v2755_v59  ;;  %v4077_v12 = vpop.f32.mrb[55].mxu1 }
 0xc58   : > { %4095 = vmatmul.mubr.bf16.vlgmr.msra.gmra.mrb[32].mxu0 %v2762_v6 }
 0xc59   : > { %4134 = vmatprep.mubr.msk.bf16.mxu0 %vm4469_vm0, %v4468_v35  ;;  %4119 = vmatpush3.bf16.msra.mxu0 %v4292_v16 }
 0xc5a   : > { %4120 = vmatprep.subr.bf16.mxu0 %v4468_v35 }
 0xc5d   : > { %4121 = vmatpush3.bf16.msra.mxu0 %v4293_v22 }
 0xc5e   : > { %4122 = vmatprep.subr.bf16.mxu0 %v4468_v35 }
 0xc61   : > { %4123 = vmatpush3.bf16.msra.mxu0 %v4294_v24 }
 0xc62   : > { %4124 = vmatprep.subr.bf16.mxu0 %v4468_v35 }
 0xc65   : > { %4125 = vmatpush3.bf16.msra.mxu0 %v4295_v11 }
 0xc66   : > { %4126 = vmatprep.subr.bf16.mxu0 %v4468_v35 }
 0xc69   : > { %4127 = vmatpush3.bf16.msra.mxu0 %v4296_v25 }
 0xc6a   : > { %4128 = vmatprep.subr.bf16.mxu0 %v4468_v35 }
 0xc6d   : > { %4129 = vmatpush3.bf16.msra.mxu0 %v4297_v26 }
 0xc6e   : > { %4130 = vmatprep.subr.bf16.mxu0 %v4468_v35 }
 0xc71   : > { %4131 = vmatpush3.bf16.msra.mxu0 %v4298_v27 }
 0xc72   : > { %4132 = vmatprep.subr.bf16.mxu0 %v4468_v35 }
 0xc73   : > { %v2934_v15 = vpop.f32.mrb[56].mxu1 }
 0xc74   : > { %v4116_v18 = vpop.f32.mrb[57].mxu1 }
 0xc75   : > { %v2937_v20 = vpop.f32.mrb[58].mxu1  ;;  %4133 = vmatpush3.bf16.msra.mxu0 %v4299_v33 }
 0xc76   : > { %v4117_v21 = vpop.f32.mrb[59].mxu1 }
 0xd2b   : > { %v2845_v28 = vpop.f32.mrb[32].mxu0 }
 0xd2c   : > { %v2935_v31 = vadd.f32 %v2934_v15, %v2845_v28  ;;  %v4096_v32 = vpop.f32.mrb[33].mxu0 }
 0xd2d   : > { %v2848_v17 = vpop.f32.mrb[34].mxu0 }
 0xd2e   : > { %v2947_v36 = vadd.f32 %v3599_v29, %v2935_v31  ;;  %v2938_v38 = vadd.f32 %v2937_v20, %v2848_v17  ;;  %v4097_v39 = vpop.f32.mrb[35].mxu0 }
 0xd30   : > { %v3600_v41 = vmul.f32 -1.442695, %v2947_v36  ;;  %v2948_v45 = vadd.f32 %v3599_v29, %v2938_v38 }
 0xd32   : > { %4384 = vpow2.f32 %v3600_v41  ;;  %v3601_v48 = vmul.f32 -1.442695, %v2948_v45 }
 0xd34   : > { %4386 = vpow2.f32 %v3601_v48 }
 0xd3c   : > { %v4385_v37 = vpop.eup %4384 }
 0xd3d   : > { %v2955_v51 = vadd.f32 1.0, %v4385_v37 }
 0xd3e   : > { %v4387_v53 = vpop.eup %4386 }
 0xd3f   : > { %4388 = vrcp.f32 %v2955_v51  ;;  %v2956_v35 = vadd.f32 1.0, %v4387_v53 }
 0xd41   : > { %4390 = vrcp.f32 %v2956_v35 }
 0xd49   : > { %v4389_v19 = vpop.eup %4388 }
 0xd4a   : > { %v2961_v3 = vmul.f32 %v4389_v19, %v2947_v36 }
 0xd4b   : > { %v4391_v23 = vpop.eup %4390 }
 0xd4c   : > { %v2962_v54 = vmul.f32 %v4391_v23, %v2948_v45 }
 0xd4e   : > { %v2963_v52 = vpack.c.bf16 %v2962_v54, %v2961_v3 }
 0xd50   : > { %4135 = vmatmul.mubr.bf16.vlgmr.msra.gmra.mrb[36].mxu0 %v2963_v52 }
 0xe23   : > { %v3052_v4 = vpop.f32.mrb[36].mxu0 }
 0xe24   : > { %v3053_v43 = vadd.f32 %v3602_v56, %v3052_v4  ;;  %v4136_v5 = vpop.f32.mrb[37].mxu0 }
 0xe25   : > { %v3055_v44 = vpop.f32.mrb[38].mxu0 }
 0xe26   : > { %3059 = vadd.xlane.f32.xlu0 %v3053_v43  ;;  %v4137_v62 = vpop.f32.mrb[39].mxu0  ;;  %v3056_v63 = vadd.f32 %v3602_v56, %v3055_v44 }
 0xe2a   : > { %3061 = vadd.xlane.f32.xlu0 %v3056_v63 }
 0xeb3   : > { %v3060_v57 = vpop.xlane.xlu0 %3059 }
 0xeb4   : > { %v3063_v34 = vmul.f32 0.03125, %v3060_v57 }
 0xeb6   : > { %v3065_v30 = vsub.f32 %v3053_v43, %v3063_v34 }
 0xeb7   : > { %v3062_v46 = vpop.xlane.xlu0 %3061 }
 0xeb8   : > { %v3064_v1 = vmul.f32 0.03125, %v3062_v46  ;;  %v3067_v58 = vmul.f32 %v3065_v30, %v3065_v30 }
 0xeba   : > { %3069 = vadd.xlane.f32.xlu0 %v3067_v58  ;;  %v3066_v0 = vsub.f32 %v3056_v63, %v3064_v1 }
 0xebc   : > { %v3068_v55 = vmul.f32 %v3066_v0, %v3066_v0 }
 0xebe   : > { %3071 = vadd.xlane.f32.xlu0 %v3068_v55 }
 0xebf   : > { %4413 = shalt.err (!%p4410_p12)
}
 0xec0   : > { %s4414_s0 = scalar_lea.hbm %s5171_s12, 512 }
 0xec1   : > { %p4415_p13 = scmp.ne.s32.totalorder %s5171_s12, %s4414_s0  ;;  %p4420_p2 = scmp.lt.u32.totalorder %s4414_s0, %s5171_s12 }
 0xec3   : > { %p4416_p0 = pnand %p4415_p13, %p4159_p5 }
 0xec5   : > { %p4417_p1 = pneg %p4416_p0 }
 0xec7   : > { %p4422_p3 = pnand %p4420_p2, %p4417_p1 }
 0xec9   : > { %4425 = shalt.err (!%p4422_p3)
}
 0xeca   : > { %s4471_s29 = smov 128   ;;  %s4472_s16 = smov 8   ;;  %v3073_v2 = vmul.f32 96.0, %v3063_v34  ;;  %v3074_v13 = vmul.f32 96.0, %v3064_v1  ;;  %v3611_v6 = vld [vmem:[%s4564_s18 + $0x6] ss:$0 sm:$0xff] }
 0xecb   : > { %4154 = dma.vmem_to_hbm [thread:$0]  (%p4159_p5), %s3137_s24, 512, %s5171_s12, [#allocation5], %s4471_s29, %s4471_s29, %s4472_s16  }
 0xecc   : > { %v3075_v7 = vmul.f32 %v3073_v2, %v3063_v34  ;;  %v3076_v42 = vmul.f32 %v3074_v13, %v3064_v1  ;;  %v3612_v15 = vld [vmem:[%s4564_s18 + $0x7] ss:$0 sm:$0xff]  ;;  %s4473_s19 = smov [#allocation2]  }
 0xecd   : > { %s3123_s15 = sshll.u32 %s4473_s19, 4  ;;  %s3124_s15 = int_to_ptr.vmem [resolvable:$true] %s3123_s15 }
 0xece   : > { %s4426_s24 = scalar_lea.vmem %s3124_s15, 256  ;;  %p4433_p8 = scmp.lt.s32.totalorder %s3124_s15, %s3124_s15 }
 0xecf   : > { %p4427_p4 = scmp.ne.s32.totalorder %s3124_s15, %s4426_s24  ;;  %p4434_p9 = scmp.lt.s32.totalorder %s4426_s24, %s4426_s24 }
 0xed1   : > { %p4428_p6 = pnand %p4427_p4, %p4159_p5  ;;  %p4435_p10 = por %p4434_p9, %p4433_p8 }
 0xed3   : > { %p4429_p7 = pneg %p4428_p6 }
 0xed5   : > { %p4436_p11 = pnand %p4435_p10, %p4429_p7 }
 0xf47   : > { %v3070_v60 = vpop.xlane.xlu0 %3069 }
 0xf48   : > { %v3077_v40 = vsub.f32 %v3070_v60, %v3075_v7 }
 0xf4a   : > { %v3079_v47 = vmul.f32 0.03125, %v3077_v40 }
 0xf4b   : > { %v3072_v9 = vpop.xlane.xlu0 %3071 }
 0xf4c   : > { %v3081_v49 = vadd.f32 1e-05, %v3079_v47  ;;  %v3078_v50 = vsub.f32 %v3072_v9, %v3076_v42 }
 0xf4e   : > { %4392 = vrsqrt.f32 %v3081_v49  ;;  %v3080_v59 = vmul.f32 0.03125, %v3078_v50 }
 0xf50   : > { %v3082_v10 = vadd.f32 1e-05, %v3080_v59 }
 0xf52   : > { %4394 = vrsqrt.f32 %v3082_v10 }
 0xf58   : > { %v4393_v61 = vpop.eup %4392 }
 0xf59   : > { %v3085_v12 = vmul.f32 %v4393_v61, %v3065_v30 }
 0xf5b   : > { %v3093_v18 = vmul.f32 %v3611_v6, %v3085_v12 }
 0xf5c   : > { %v4395_v20 = vpop.eup %4394 }
 0xf5d   : > { %v3086_v21 = vmul.f32 %v4395_v20, %v3066_v0  ;;  %v3101_v16 = vadd.f32 %v3612_v15, %v3093_v18 }
 0xf5f   : > { %v3094_v22 = vmul.f32 %v3611_v6, %v3086_v21  ;;  %v3103_v24 = vadd.f32 %v3101_v16, %v4923_v14 }
 0xf61   : > { %v3102_v11 = vadd.f32 %v3612_v15, %v3094_v22  ;;  %3115 = vst [vmem:[#allocation2] sm:$0xff] %v3103_v24 }
 0xf63   : > { %v3104_v25 = vadd.f32 %v3102_v11, %v4925_v8 }
 0xf65   : > { %3116 = vst [vmem:[#allocation2 + $0x8] sm:$0xff] %v3104_v25 }
 0xf66   : > { %4439 = shalt.err (!%p4436_p11)
}
 0xf67   : > { %s4440_s22 = scalar_lea.hbm %s5170_s11, 256 }
 0xf68   : > { %p4441_p12 = scmp.ne.s32.totalorder %s5170_s11, %s4440_s22  ;;  %p4446_p1 = scmp.lt.u32.totalorder %s4440_s22, %s5170_s11 }
 0xf6a   : > { %p4442_p13 = pnand %p4441_p12, %p4159_p5 }
 0xf6c   : > { %p4443_p0 = pneg %p4442_p13 }
 0xf6e   : > { %p4448_p2 = pnand %p4446_p1, %p4443_p0 }
 0xf70   : > { %4451 = shalt.err (!%p4448_p2)
}
 0xf71   : > { %4152 = dma.vmem_to_hbm [thread:$0]  (%p4159_p5), %s3124_s15, 256, %s5170_s11, [#allocation3], %s4471_s29, %s4471_s29, %s4472_s16  }
 0xf72   : > { %4457 = dma.done.wait (%p4159_p5), [#allocation3], 256  }
 0xf73   : > { %4459 = vsyncadd (%p4159_p5), [#allocation3], 4294967040 }
 0xf74   : > { %4461 = dma.done.wait (%p4159_p5), [#allocation5], 512  }
 0xf75   : > { %4463 = vsyncadd (%p4159_p5), [#allocation5], 4294966784 }
 0xf76 PF: > { %s26_s25 = sadd.s32 1, %s4466_s25  }
 0xf77   : > { %p23_p3 = scmp.ge.s32.totalorder %s26_s25, 4  }
 0xf79   :  { %25 = sbr.rel (!%p23_p3) target bundleno = 4 (0x4), region = 146 }
 0xf80   :  { %3162 = vsyncpa [#allocation3], 1 }
 0xf81   :  { %3164 = vsyncpa [#allocation3 + $0x1], 1 }
 0xf82   :  { %3165 = vsyncpa [#allocation5], 1 }

</bundles_post_ra>
